<compile_context>
chip_gen: v6e
topology: v6e:2x2x1
jax: 0.10.0
libtpu: 0.0.40
codegen_flags: <defaults>
</compile_context>

<pallas_src>
import functools

import jax
import jax.numpy as jnp
import numpy as np
from jax import lax
from jax.experimental import pallas as pl
from jax.experimental.pallas import tpu as pltpu


def _interp_matrix(n_in, n_out):
    """1-D linear interpolation operator matching nn.Upsample(align_corners=True)."""
    m = np.zeros((n_out, n_in), np.float32)
    if n_in == 1 or n_out == 1:
        m[:, 0] = 1.0
        return m
    scale = (n_in - 1) / (n_out - 1)
    for i in range(n_out):
        src = i * scale
        i0 = min(int(np.floor(src)), n_in - 1)
        i1 = min(i0 + 1, n_in - 1)
        f = src - i0
        m[i, i0] += 1.0 - f
        m[i, i1] += f
    return m


@functools.lru_cache(maxsize=None)
def _bilinear_operator_np(hi, wi, scale_factor):
    """Flattened bilinear operator with the 3x3 conv's H zero-pad ring folded in.

    Returns U of shape (Hi*Wi, (Ho+4)*Wo):  x_flat (C, Hi*Wi) @ U gives the
    align_corners=True upsampled image with two zero rows above and below, so every
    3x3 tap of the flattened map is a contiguous, in-bounds lane slice.
    """
    ho, wo = hi * scale_factor, wi * scale_factor
    mh = _interp_matrix(hi, ho)                  # (Ho, Hi)
    mw = _interp_matrix(wi, wo)                  # (Wo, Wi)
    mh_ext = np.zeros((ho + 4, hi), np.float32)
    mh_ext[2:ho + 2] = mh
    return np.ascontiguousarray(np.kron(mh_ext, mw).T)   # (Hi*Wi, (Ho+4)*Wo)


def _upsample_kernel(x_ref, u_ref, wc_ref, b_ref, o_ref, up_scr, col_scr,
                     *, ho, wo, c_pad):
    """One batch image per grid step; everything lane-dense (spatial on lanes).

    x_ref  : (1, C_pad, Hi*Wi)      bf16 input image, spatial flattened on lanes
    u_ref  : (Hi*Wi, (Ho+4)*Wo)     bf16 bilinear operator kron(Mh_ext, Mw)
    wc_ref : (C_out, 9*C_pad)       f32 folded weights  Wc[o, k*C_pad+c] = w1[o,c]*wdw[c,k]
    b_ref  : (C_out, 1)             f32 folded bias     b_1x1 + w_1x1 @ b_dw
    o_ref  : (1, C_out, Ho*Wo)      f32 output
    up_scr : (3*C_pad, (Ho+4)*Wo)   f32 scratch: [up ; up w/ col wo-1 zeroed ; up w/ col 0 zeroed]
    col_scr: (9*C_pad, Ho*Wo)       f32 scratch: im2col panel, 9 taps stacked on sublanes
    """
    hw = ho * wo
    wext = (ho + 4) * wo

    # ---- bilinear upsample (align_corners=True) + H pad ring: one MXU matmul ----
    up = jnp.dot(x_ref[0], u_ref[...], preferred_element_type=jnp.float32)  # (C_pad, wext)

    # W-edge zero padding applied once on the source map (not per tap):
    #   kw=0 taps read column c-1 -> the wrapped/invalid source column is wo-1
    #   kw=2 taps read column c+1 -> the wrapped/invalid source column is 0
    col_idx = lax.broadcasted_iota(jnp.int32, (1, wext), 1) % wo
    up_scr[0 * c_pad:1 * c_pad, :] = up
    up_scr[1 * c_pad:2 * c_pad, :] = up * (col_idx != wo - 1).astype(jnp.float32)
    up_scr[2 * c_pad:3 * c_pad, :] = up * (col_idx != 0).astype(jnp.float32)

    # ---- im2col: each 3x3 tap is a contiguous lane slice of the flat padded map;
    #      stack the 9 taps on (8-aligned) sublanes to build one (9*C_pad, HW) panel ----
    for k in range(9):
        kh, kw = divmod(k, 3)
        sel = 1 if kw == 0 else (2 if kw == 2 else 0)
        off = (kh + 1) * wo + (kw - 1)
        col_scr[k * c_pad:(k + 1) * c_pad, :] = (
            up_scr[sel * c_pad:(sel + 1) * c_pad, off:off + hw])

    # ---- depthwise-3x3 + 1x1 conv fused as ONE GEMM (K = 9*C_pad = 216) ----
    out = jnp.dot(wc_ref[...], col_scr[...], preferred_element_type=jnp.float32)
    o_ref[0] = out + b_ref[...]                          # lane-dense store (12, 1024)


@functools.partial(jax.jit, static_argnames=("scale_factor",))
def upsample_forward(x, dw_w, dw_b, pw_w, pw_b, scale_factor=2):
    """NCHW in / NCHW out, matching the PyTorch `upsample` module's forward."""
    n, c, hi, wi = x.shape
    c_out = pw_w.shape[0]
    ho, wo = hi * scale_factor, wi * scale_factor
    hw_in, hw_out, wext = hi * wi, ho * wo, (ho + 4) * wo
    c_pad = -(-c // 8) * 8                               # 18 -> 24 (sublane aligned)

    # Static interpolation operator (cached on host, a jit constant here) in bf16.
    u = jnp.asarray(_bilinear_operator_np(hi, wi, scale_factor), dtype=jnp.bfloat16)

    # Fold the depthwise 3x3 into the 1x1 conv (tiny weight-side math, traced once).
    wdw = dw_w.reshape(c, 9).astype(jnp.float32)          # (C, 9), tap k = kh*3 + kw
    w1 = pw_w.reshape(c_out, c).astype(jnp.float32)       # (C_out, C)
    wc = w1[None, :, :] * wdw.T[:, None, :]               # (9, C_out, C)
    wc = jnp.pad(wc, ((0, 0), (0, 0), (0, c_pad - c)))    # (9, C_out, C_pad)
    wc = jnp.transpose(wc, (1, 0, 2)).reshape(c_out, 9 * c_pad)   # (C_out, 9*C_pad)
    b = (pw_b.astype(jnp.float32) + w1 @ dw_b.astype(jnp.float32)).reshape(c_out, 1)

    # Channel-padded, lane-dense, bf16 activations.
    x_flat = jnp.pad(x, ((0, 0), (0, c_pad - c), (0, 0), (0, 0)))
    x_flat = x_flat.reshape(n, c_pad, hw_in).astype(jnp.bfloat16)

    kernel = functools.partial(_upsample_kernel, ho=ho, wo=wo, c_pad=c_pad)
    out_flat = pl.pallas_call(
        kernel,
        out_shape=jax.ShapeDtypeStruct((n, c_out, hw_out), jnp.float32),
        grid=(n,),
        in_specs=[
            pl.BlockSpec((1, c_pad, hw_in), lambda i: (i, 0, 0)),
            pl.BlockSpec((hw_in, wext), lambda i: (0, 0)),        # grid-invariant
            pl.BlockSpec((c_out, 9 * c_pad), lambda i: (0, 0)),   # grid-invariant
            pl.BlockSpec((c_out, 1), lambda i: (0, 0)),           # grid-invariant
        ],
        out_specs=pl.BlockSpec((1, c_out, hw_out), lambda i: (i, 0, 0)),
        scratch_shapes=[
            pltpu.VMEM((3 * c_pad, wext), jnp.float32),    # up + 2 pre-masked copies
            pltpu.VMEM((9 * c_pad, hw_out), jnp.float32),  # im2col panel (216, 1024)
        ],
        compiler_params=pltpu.CompilerParams(
            dimension_semantics=("parallel",),   # one image per v7x TensorCore
        ),
    )(x_flat, u, wc, b)
    return out_flat.reshape(n, c_out, ho, wo)


def upsample_reference(x, dw_w, dw_b, pw_w, pw_b, scale_factor=2):
    """Pure JAX/XLA reference with PyTorch semantics (bilinear, align_corners=True)."""
    n, c, h, w = x.shape
    ho, wo = h * scale_factor, w * scale_factor

    def lerp(v, n_in, n_out, axis):
        src = jnp.arange(n_out, dtype=jnp.float32) * ((n_in - 1) / (n_out - 1))
        i0 = jnp.clip(jnp.floor(src).astype(jnp.int32), 0, n_in - 1)
        i1 = jnp.clip(i0 + 1, 0, n_in - 1)
        f = src - i0.astype(jnp.float32)
        shp = [1] * v.ndim
        shp[axis] = n_out
        f = f.reshape(shp)
        return jnp.take(v, i0, axis=axis) * (1.0 - f) + jnp.take(v, i1, axis=axis) * f

    up = lerp(x, h, ho, 2)
    up = lerp(up, w, wo, 3)

    y = lax.conv_general_dilated(
        up, dw_w, (1, 1), ((1, 1), (1, 1)),
        dimension_numbers=("NCHW", "OIHW", "NCHW"),
        feature_group_count=c, precision=lax.Precision.HIGHEST)
    y = y + dw_b.reshape(1, c, 1, 1)
    z = lax.conv_general_dilated(
        y, pw_w, (1, 1), ((0, 0), (0, 0)),
        dimension_numbers=("NCHW", "OIHW", "NCHW"),
        precision=lax.Precision.HIGHEST)
    return z + pw_b.reshape(1, -1, 1, 1)


if __name__ == "__main__":
    # Module defaults: in_channels=18 -> out_channels=12, scale_factor=2.
    N, C_IN, C_OUT, H, W = 2, 18, 12, 16, 16
    key = jax.random.PRNGKey(0)
    kx, k1, k2, k3, k4 = jax.random.split(key, 5)

    x = jax.random.normal(kx, (N, C_IN, H, W), dtype=jnp.float32)
    dw_w = 0.1 * jax.random.normal(k1, (C_IN, 1, 3, 3), dtype=jnp.float32)   # depthwise OIHW
    dw_b = 0.1 * jax.random.normal(k2, (C_IN,), dtype=jnp.float32)
    pw_w = 0.1 * jax.random.normal(k3, (C_OUT, C_IN, 1, 1), dtype=jnp.float32)
    pw_b = 0.1 * jax.random.normal(k4, (C_OUT,), dtype=jnp.float32)

    out = jax.block_until_ready(upsample_forward(x, dw_w, dw_b, pw_w, pw_b))
    ref = jax.block_until_ready(upsample_reference(x, dw_w, dw_b, pw_w, pw_b))

    # Tolerance covers MXU bf16 operand rounding (same as default-precision dots);
    # genuine indexing/layout/weight-folding bugs show up at O(0.1) error.
    np.testing.assert_allclose(np.asarray(out), np.asarray(ref), rtol=1e-2, atol=1e-2)
    print("KERNEL_OK")
</pallas_src>

<mosaic_0001>
module attributes {stable_mosaic.version = 11 : i64} {
  func.func @_upsample_kernel(%arg0: i32, %arg1: memref<1x24x256xbf16, #tpu.memory_space<vmem>>, %arg2: memref<256x1152xbf16, #tpu.memory_space<vmem>>, %arg3: memref<12x216xf32, #tpu.memory_space<vmem>>, %arg4: memref<12x1xf32, #tpu.memory_space<vmem>>, %arg5: memref<1x12x1024xf32, #tpu.memory_space<vmem>>, %arg6: memref<72x1152xf32, #tpu.memory_space<vmem>>, %arg7: memref<216x1024xf32, #tpu.memory_space<vmem>>) attributes {dimension_semantics = [#tpu.dimension_semantics<parallel>], iteration_bounds = array<i64: 2>, scalar_prefetch = 0 : i64, scratch_operands = 2 : i64, tpu.core_type = #tpu.core_type<tc>, window_params = [{transform_indices = @transform_0, window_bounds = array<i64: 1, 24, 256>}, {pipeline_mode = #tpu.pipeline_mode<synchronous>, transform_indices = @transform_1, window_bounds = array<i64: 256, 1152>}, {pipeline_mode = #tpu.pipeline_mode<synchronous>, transform_indices = @transform_2, window_bounds = array<i64: 12, 216>}, {pipeline_mode = #tpu.pipeline_mode<synchronous>, transform_indices = @transform_3, window_bounds = array<i64: 12, 1>}, {transform_indices = @transform_4, window_bounds = array<i64: 1, 12, 1024>}]} {
    %c0 = arith.constant 0 : index
    %c0_0 = arith.constant 0 : index
    %c0_1 = arith.constant 0 : index
    %0 = vector.load %arg1[%c0, %c0_0, %c0_1] : memref<1x24x256xbf16, #tpu.memory_space<vmem>>, vector<1x24x256xbf16>
    %1 = vector.shape_cast %0 : vector<1x24x256xbf16> to vector<24x256xbf16>
    %c0_2 = arith.constant 0 : index
    %c0_3 = arith.constant 0 : index
    %2 = vector.load %arg2[%c0_2, %c0_3] : memref<256x1152xbf16, #tpu.memory_space<vmem>>, vector<256x1152xbf16>
    %cst = arith.constant dense<0.000000e+00> : vector<24x1152xf32>
    %3 = tpu.matmul %1, %2, %cst {dimension_numbers = #tpu.dot_dimension_numbers<[1], [0], [0], [1], [0, 0, 1, 1], [], []>} : vector<24x256xbf16>, vector<256x1152xbf16>, vector<24x1152xf32> -> vector<24x1152xf32>
    %4 = tpu.iota {dimensions = array<i32: 1>} : vector<1x1152xi32>
    %c32_i32 = arith.constant 32 : i32
    %c0_i32 = arith.constant 0 : i32
    %5 = arith.cmpi eq, %c32_i32, %c0_i32 : i32
    %c1_i32 = arith.constant 1 : i32
    %6 = arith.select %5, %c1_i32, %c32_i32 : i32
    %7 = vector.broadcast %6 : i32 to vector<1x1152xi32>
    %8 = arith.remsi %4, %7 : vector<1x1152xi32>
    %c0_i32_4 = arith.constant 0 : i32
    %9 = vector.broadcast %c0_i32_4 : i32 to vector<1x1152xi32>
    %10 = arith.cmpi ne, %8, %9 : vector<1x1152xi32>
    %c0_i32_5 = arith.constant 0 : i32
    %11 = vector.broadcast %c0_i32_5 : i32 to vector<1x1152xi32>
    %12 = arith.cmpi slt, %8, %11 : vector<1x1152xi32>
    %c0_i32_6 = arith.constant 0 : i32
    %13 = arith.cmpi slt, %6, %c0_i32_6 : i32
    %14 = vector.broadcast %13 : i1 to vector<1x1152xi1>
    %15 = vector.broadcast %14 : vector<1x1152xi1> to vector<1x1152xi1>
    %16 = arith.xori %12, %15 : vector<1x1152xi1>
    %17 = arith.andi %16, %10 : vector<1x1152xi1>
    %18 = vector.broadcast %6 : i32 to vector<1x1152xi32>
    %19 = arith.addi %8, %18 : vector<1x1152xi32>
    %20 = arith.select %17, %19, %8 : vector<1x1152xi1>, vector<1x1152xi32>
    %c0_7 = arith.constant 0 : index
    %c0_8 = arith.constant 0 : index
    %21 = vector.load %arg6[%c0_7, %c0_8] : memref<72x1152xf32, #tpu.memory_space<vmem>>, vector<24x1152xf32>
    tpu.vector_store %arg6[%c0_7, %c0_8], %3 {strides = array<i32>} : memref<72x1152xf32, #tpu.memory_space<vmem>>, vector<24x1152xf32>,
    %c31_i32 = arith.constant 31 : i32
    %22 = vector.broadcast %c31_i32 : i32 to vector<1x1152xi32>
    %23 = arith.cmpi ne, %20, %22 : vector<1x1152xi32>
    %24 = arith.extui %23 : vector<1x1152xi1> to vector<1x1152xi32>
    %25 = arith.sitofp %24 : vector<1x1152xi32> to vector<1x1152xf32>
    %26 = vector.broadcast %25 : vector<1x1152xf32> to vector<24x1152xf32>
    %27 = arith.mulf %3, %26 : vector<24x1152xf32>
    %c24 = arith.constant 24 : index
    %c0_9 = arith.constant 0 : index
    %28 = vector.load %arg6[%c24, %c0_9] : memref<72x1152xf32, #tpu.memory_space<vmem>>, vector<24x1152xf32>
    tpu.vector_store %arg6[%c24, %c0_9], %27 {strides = array<i32>} : memref<72x1152xf32, #tpu.memory_space<vmem>>, vector<24x1152xf32>,
    %c0_i32_10 = arith.constant 0 : i32
    %29 = vector.broadcast %c0_i32_10 : i32 to vector<1x1152xi32>
    %30 = arith.cmpi ne, %20, %29 : vector<1x1152xi32>
    %31 = arith.extui %30 : vector<1x1152xi1> to vector<1x1152xi32>
    %32 = arith.sitofp %31 : vector<1x1152xi32> to vector<1x1152xf32>
    %33 = vector.broadcast %32 : vector<1x1152xf32> to vector<24x1152xf32>
    %34 = arith.mulf %3, %33 : vector<24x1152xf32>
    %c48 = arith.constant 48 : index
    %c0_11 = arith.constant 0 : index
    %35 = vector.load %arg6[%c48, %c0_11] : memref<72x1152xf32, #tpu.memory_space<vmem>>, vector<24x1152xf32>
    tpu.vector_store %arg6[%c48, %c0_11], %34 {strides = array<i32>} : memref<72x1152xf32, #tpu.memory_space<vmem>>, vector<24x1152xf32>,
    %c24_12 = arith.constant 24 : index
    %c31 = arith.constant 31 : index
    %36 = vector.load %arg6[%c24_12, %c31] : memref<72x1152xf32, #tpu.memory_space<vmem>>, vector<24x1024xf32>
    %c0_13 = arith.constant 0 : index
    %c0_14 = arith.constant 0 : index
    %37 = vector.load %arg7[%c0_13, %c0_14] : memref<216x1024xf32, #tpu.memory_space<vmem>>, vector<24x1024xf32>
    tpu.vector_store %arg7[%c0_13, %c0_14], %36 {strides = array<i32>} : memref<216x1024xf32, #tpu.memory_space<vmem>>, vector<24x1024xf32>,
    %c0_15 = arith.constant 0 : index
    %c32 = arith.constant 32 : index
    %38 = vector.load %arg6[%c0_15, %c32] : memref<72x1152xf32, #tpu.memory_space<vmem>>, vector<24x1024xf32>
    %c24_16 = arith.constant 24 : index
    %c0_17 = arith.constant 0 : index
    %39 = vector.load %arg7[%c24_16, %c0_17] : memref<216x1024xf32, #tpu.memory_space<vmem>>, vector<24x1024xf32>
    tpu.vector_store %arg7[%c24_16, %c0_17], %38 {strides = array<i32>} : memref<216x1024xf32, #tpu.memory_space<vmem>>, vector<24x1024xf32>,
    %c48_18 = arith.constant 48 : index
    %c33 = arith.constant 33 : index
    %40 = vector.load %arg6[%c48_18, %c33] : memref<72x1152xf32, #tpu.memory_space<vmem>>, vector<24x1024xf32>
    %c48_19 = arith.constant 48 : index
    %c0_20 = arith.constant 0 : index
    %41 = vector.load %arg7[%c48_19, %c0_20] : memref<216x1024xf32, #tpu.memory_space<vmem>>, vector<24x1024xf32>
    tpu.vector_store %arg7[%c48_19, %c0_20], %40 {strides = array<i32>} : memref<216x1024xf32, #tpu.memory_space<vmem>>, vector<24x1024xf32>,
    %c24_21 = arith.constant 24 : index
    %c63 = arith.constant 63 : index
    %42 = vector.load %arg6[%c24_21, %c63] : memref<72x1152xf32, #tpu.memory_space<vmem>>, vector<24x1024xf32>
    %c72 = arith.constant 72 : index
    %c0_22 = arith.constant 0 : index
    %43 = vector.load %arg7[%c72, %c0_22] : memref<216x1024xf32, #tpu.memory_space<vmem>>, vector<24x1024xf32>
    tpu.vector_store %arg7[%c72, %c0_22], %42 {strides = array<i32>} : memref<216x1024xf32, #tpu.memory_space<vmem>>, vector<24x1024xf32>,
    %c0_23 = arith.constant 0 : index
    %c64 = arith.constant 64 : index
    %44 = vector.load %arg6[%c0_23, %c64] : memref<72x1152xf32, #tpu.memory_space<vmem>>, vector<24x1024xf32>
    %c96 = arith.constant 96 : index
    %c0_24 = arith.constant 0 : index
    %45 = vector.load %arg7[%c96, %c0_24] : memref<216x1024xf32, #tpu.memory_space<vmem>>, vector<24x1024xf32>
    tpu.vector_store %arg7[%c96, %c0_24], %44 {strides = array<i32>} : memref<216x1024xf32, #tpu.memory_space<vmem>>, vector<24x1024xf32>,
    %c48_25 = arith.constant 48 : index
    %c65 = arith.constant 65 : index
    %46 = vector.load %arg6[%c48_25, %c65] : memref<72x1152xf32, #tpu.memory_space<vmem>>, vector<24x1024xf32>
    %c120 = arith.constant 120 : index
    %c0_26 = arith.constant 0 : index
    %47 = vector.load %arg7[%c120, %c0_26] : memref<216x1024xf32, #tpu.memory_space<vmem>>, vector<24x1024xf32>
    tpu.vector_store %arg7[%c120, %c0_26], %46 {strides = array<i32>} : memref<216x1024xf32, #tpu.memory_space<vmem>>, vector<24x1024xf32>,
    %c24_27 = arith.constant 24 : index
    %c95 = arith.constant 95 : index
    %48 = vector.load %arg6[%c24_27, %c95] : memref<72x1152xf32, #tpu.memory_space<vmem>>, vector<24x1024xf32>
    %c144 = arith.constant 144 : index
    %c0_28 = arith.constant 0 : index
    %49 = vector.load %arg7[%c144, %c0_28] : memref<216x1024xf32, #tpu.memory_space<vmem>>, vector<24x1024xf32>
    tpu.vector_store %arg7[%c144, %c0_28], %48 {strides = array<i32>} : memref<216x1024xf32, #tpu.memory_space<vmem>>, vector<24x1024xf32>,
    %c0_29 = arith.constant 0 : index
    %c96_30 = arith.constant 96 : index
    %50 = vector.load %arg6[%c0_29, %c96_30] : memref<72x1152xf32, #tpu.memory_space<vmem>>, vector<24x1024xf32>
    %c168 = arith.constant 168 : index
    %c0_31 = arith.constant 0 : index
    %51 = vector.load %arg7[%c168, %c0_31] : memref<216x1024xf32, #tpu.memory_space<vmem>>, vector<24x1024xf32>
    tpu.vector_store %arg7[%c168, %c0_31], %50 {strides = array<i32>} : memref<216x1024xf32, #tpu.memory_space<vmem>>, vector<24x1024xf32>,
    %c48_32 = arith.constant 48 : index
    %c97 = arith.constant 97 : index
    %52 = vector.load %arg6[%c48_32, %c97] : memref<72x1152xf32, #tpu.memory_space<vmem>>, vector<24x1024xf32>
    %c192 = arith.constant 192 : index
    %c0_33 = arith.constant 0 : index
    %53 = vector.load %arg7[%c192, %c0_33] : memref<216x1024xf32, #tpu.memory_space<vmem>>, vector<24x1024xf32>
    tpu.vector_store %arg7[%c192, %c0_33], %52 {strides = array<i32>} : memref<216x1024xf32, #tpu.memory_space<vmem>>, vector<24x1024xf32>,
    %c0_34 = arith.constant 0 : index
    %c0_35 = arith.constant 0 : index
    %54 = vector.load %arg3[%c0_34, %c0_35] : memref<12x216xf32, #tpu.memory_space<vmem>>, vector<12x216xf32>
    %c0_36 = arith.constant 0 : index
    %c0_37 = arith.constant 0 : index
    %55 = vector.load %arg7[%c0_36, %c0_37] : memref<216x1024xf32, #tpu.memory_space<vmem>>, vector<216x1024xf32>
    %cst_38 = arith.constant dense<0.000000e+00> : vector<12x1024xf32>
    %56 = tpu.matmul %54, %55, %cst_38 {dimension_numbers = #tpu.dot_dimension_numbers<[1], [0], [0], [1], [0, 0, 1, 1], [], []>} : vector<12x216xf32>, vector<216x1024xf32>, vector<12x1024xf32> -> vector<12x1024xf32>
    %c0_39 = arith.constant 0 : index
    %c0_40 = arith.constant 0 : index
    %57 = vector.load %arg4[%c0_39, %c0_40] : memref<12x1xf32, #tpu.memory_space<vmem>>, vector<12x1xf32>
    %58 = vector.broadcast %57 : vector<12x1xf32> to vector<12x1024xf32>
    %59 = arith.addf %56, %58 : vector<12x1024xf32>
    %c0_41 = arith.constant 0 : index
    %c0_42 = arith.constant 0 : index
    %c0_43 = arith.constant 0 : index
    %60 = vector.load %arg5[%c0_41, %c0_42, %c0_43] : memref<1x12x1024xf32, #tpu.memory_space<vmem>>, vector<1x12x1024xf32>
    %61 = vector.shape_cast %60 : vector<1x12x1024xf32> to vector<12x1024xf32>
    %62 = vector.shape_cast %59 : vector<12x1024xf32> to vector<1x12x1024xf32>
    tpu.vector_store %arg5[%c0_41, %c0_42, %c0_43], %62 {strides = array<i32>} : memref<1x12x1024xf32, #tpu.memory_space<vmem>>, vector<1x12x1024xf32>,
    return
  }
  func.func @transform_0(%arg0: i32) -> (i32, i32, i32) {
    %c0_i32 = arith.constant 0 : i32
    %c0_i32_0 = arith.constant 0 : i32
    %c0_i32_1 = arith.constant 0 : i32
    return %arg0, %c0_i32, %c0_i32_0 : i32, i32, i32
  }
  func.func @transform_1(%arg0: i32) -> (i32, i32) {
    %c0_i32 = arith.constant 0 : i32
    %c0_i32_0 = arith.constant 0 : i32
    %c0_i32_1 = arith.constant 0 : i32
    return %c0_i32, %c0_i32_0 : i32, i32
  }
  func.func @transform_2(%arg0: i32) -> (i32, i32) {
    %c0_i32 = arith.constant 0 : i32
    %c0_i32_0 = arith.constant 0 : i32
    %c0_i32_1 = arith.constant 0 : i32
    return %c0_i32, %c0_i32_0 : i32, i32
  }
  func.func @transform_3(%arg0: i32) -> (i32, i32) {
    %c0_i32 = arith.constant 0 : i32
    %c0_i32_0 = arith.constant 0 : i32
    %c0_i32_1 = arith.constant 0 : i32
    return %c0_i32, %c0_i32_0 : i32, i32
  }
  func.func @transform_4(%arg0: i32) -> (i32, i32, i32) {
    %c0_i32 = arith.constant 0 : i32
    %c0_i32_0 = arith.constant 0 : i32
    %c0_i32_1 = arith.constant 0 : i32
    return %arg0, %c0_i32, %c0_i32_0 : i32, i32, i32
  }
}

</mosaic_0001>

<bundles_post_ra>
// kernel: upsample_forward.1
= control target key start
LH: loop header
LB: loop body
LE: loop exit
PB: predicated region body
PF: predicated region fallthrough
CT: control target
= control target key end

     0   :  { %s4415_s15 = smov 0   ;;  %s6502_s0 = inlined_call_operand.vmem [shape: bf16[2,24,256], index: 0, kind: input, shape index: {}]   ;;  %s6503_s1 = inlined_call_operand.vmem [shape: bf16[256,1152], index: 1, kind: input, shape index: {}]   ;;  %s6504_s2 = inlined_call_operand.vmem [shape: f32[12,216], index: 2, kind: input, shape index: {}]   ;;  %s6505_s3 = inlined_call_operand.vmem [shape: f32[12,1], index: 3, kind: input, shape index: {}]   ;;  %s6506_s4 = inlined_call_operand.vmem [shape: f32[2,12,1024], index: 4, kind: output, shape index: {}]  }
   0x1 LB: > { %s3921_s16 = sadd.s32 4294967295, %s4377_s15   ;;  %p3925_p0 = scmp.ge.s32.totalorder %s4377_s15, 1  ;;  %s4377_s15 = sphi %s4415_s15, %s14_s15  }
   0x2   : > { %p162_p1 = scmp.lt.s32.totalorder %s4377_s15, 3 }
   0x4   : > { %p163_p2 = pnand %p3925_p0, %p162_p1 }
   0x6   : > { %166 = sbr.rel (%p163_p2) target bundleno = 1076 (0x434), region = 36 }
   0xb   : > { %v4156_v0 = vld [vmem:[%s6503_s1 + $0x1fc] ss:$36 sps:$4 sm:$0xff]   ;;  %v4158_v1 = vld [vmem:[%s6503_s1 + $0x204] ss:$36 sps:$4 sm:$0xff]   ;;  %v4162_v4 = vld [vmem:[%s6503_s1 + $0x1b4] ss:$36 sps:$4 sm:$0xff]  }
   0xc   : > { %1115 = vmatprep.subr.bf16.mxu0 %v4156_v0  ;;  %v4160_v2 = vld [vmem:[%s6503_s1 + $0x1f8] ss:$36 sps:$4 sm:$0xff]   ;;  %v4161_v3 = vld [vmem:[%s6503_s1 + $0x200] ss:$36 sps:$4 sm:$0xff]   ;;  %1166 = vmatprep.subr.bf16.mxu1 %v4158_v1  ;;  %v4166_v6 = vld [vmem:[%s6503_s1 + $0x1b0] ss:$36 sps:$4 sm:$0xff]  }
   0xd   : > { %1116 = vmatpush1.bf16.msra.mxu0 %v4160_v2  ;;  %1167 = vmatpush1.bf16.msra.mxu1 %v4161_v3  ;;  %v4164_v5 = vld [vmem:[%s6503_s1 + $0x1bc] ss:$36 sps:$4 sm:$0xff]   ;;  %v4168_v8 = vld [vmem:[%s6503_s1 + $0x16c] ss:$36 sps:$4 sm:$0xff]   ;;  %v4170_v9 = vld [vmem:[%s6503_s1 + $0x174] ss:$36 sps:$4 sm:$0xff]  }
   0xe   : > { %1117 = vmatprep.subr.bf16.mxu0 %v4162_v4  ;;  %v4167_v7 = vld [vmem:[%s6503_s1 + $0x1b8] ss:$36 sps:$4 sm:$0xff]   ;;  %1168 = vmatprep.subr.bf16.mxu1 %v4164_v5  ;;  %v4172_v10 = vld [vmem:[%s6503_s1 + $0x168] ss:$36 sps:$4 sm:$0xff]   ;;  %v4173_v11 = vld [vmem:[%s6503_s1 + $0x170] ss:$36 sps:$4 sm:$0xff]  }
   0xf   : > { %v4174_v12 = vld [vmem:[%s6503_s1 + $0x124] ss:$36 sps:$4 sm:$0xff]   ;;  %v4176_v13 = vld [vmem:[%s6503_s1 + $0x12c] ss:$36 sps:$4 sm:$0xff]   ;;  %v4180_v16 = vld [vmem:[%s6503_s1 + $0xdc] ss:$36 sps:$4 sm:$0xff]  }
  0x10   : > { %v4178_v14 = vld [vmem:[%s6503_s1 + $0x120] ss:$36 sps:$4 sm:$0xff]   ;;  %v4179_v15 = vld [vmem:[%s6503_s1 + $0x128] ss:$36 sps:$4 sm:$0xff]   ;;  %v4184_v18 = vld [vmem:[%s6503_s1 + $0xd8] ss:$36 sps:$4 sm:$0xff]  }
  0x11   : > { %1118 = vmatpush1.bf16.msra.mxu0 %v4166_v6  ;;  %1169 = vmatpush1.bf16.msra.mxu1 %v4167_v7  ;;  %v4182_v17 = vld [vmem:[%s6503_s1 + $0xe4] ss:$36 sps:$4 sm:$0xff]   ;;  %v4186_v20 = vld [vmem:[%s6503_s1 + $0x94] ss:$36 sps:$4 sm:$0xff]   ;;  %v4188_v21 = vld [vmem:[%s6503_s1 + $0x9c] ss:$36 sps:$4 sm:$0xff]  }
  0x12   : > { %1119 = vmatprep.subr.bf16.mxu0 %v4168_v8  ;;  %1170 = vmatprep.subr.bf16.mxu1 %v4170_v9  ;;  %v4185_v19 = vld [vmem:[%s6503_s1 + $0xe0] ss:$36 sps:$4 sm:$0xff]   ;;  %v4190_v22 = vld [vmem:[%s6503_s1 + $0x90] ss:$36 sps:$4 sm:$0xff]   ;;  %v4191_v23 = vld [vmem:[%s6503_s1 + $0x98] ss:$36 sps:$4 sm:$0xff]  }
  0x13   : > { %v4192_v24 = vld [vmem:[%s6503_s1 + $0x4c] ss:$36 sps:$4 sm:$0xff]   ;;  %v4194_v25 = vld [vmem:[%s6503_s1 + $0x54] ss:$36 sps:$4 sm:$0xff]   ;;  %v4198_v28 = vld [vmem:[%s6503_s1 + $0x4] ss:$36 sps:$4 sm:$0xff]  }
  0x14   : > { %v4196_v26 = vld [vmem:[%s6503_s1 + $0x48] ss:$36 sps:$4 sm:$0xff]   ;;  %v4197_v27 = vld [vmem:[%s6503_s1 + $0x50] ss:$36 sps:$4 sm:$0xff]   ;;  %v4202_v30 = vld [vmem:[%s6503_s1] ss:$36 sps:$4 sm:$0xff]  }
  0x15   : > { %1120 = vmatpush1.bf16.msra.mxu0 %v4172_v10  ;;  %1171 = vmatpush1.bf16.msra.mxu1 %v4173_v11  ;;  %v4200_v29 = vld [vmem:[%s6503_s1 + $0xc] ss:$36 sps:$4 sm:$0xff]   ;;  %v4204_v32 = vld [vmem:[%s6503_s1 + $0x43c] ss:$36 sps:$4 sm:$0xff]   ;;  %p188_p3 = scmp.lt.s32.totalorder %s3921_s16, 1  ;;  %s4379_s18 = smov 64  }
  0x16   : > { %1121 = vmatprep.subr.bf16.mxu0 %v4174_v12  ;;  %1172 = vmatprep.subr.bf16.mxu1 %v4176_v13  ;;  %v4203_v31 = vld [vmem:[%s6503_s1 + $0x8] ss:$36 sps:$4 sm:$0xff]   ;;  %v4208_v34 = vld [vmem:[%s6503_s1 + $0x438] ss:$36 sps:$4 sm:$0xff]   ;;  %v4209_v35 = vld [vmem:[%s6503_s1 + $0x440] ss:$36 sps:$4 sm:$0xff]  }
  0x17   : > { %v4206_v33 = vld [vmem:[%s6503_s1 + $0x444] ss:$36 sps:$4 sm:$0xff]   ;;  %v4210_v36 = vld [vmem:[%s6503_s1 + $0x3f4] ss:$36 sps:$4 sm:$0xff]   ;;  %s6840_s16 = smov (!%p188_p3, %s3921_s16), 1  ;;  %s4380_s19 = smov 96  }
  0x18   : > { %v4212_v37 = vld [vmem:[%s6503_s1 + $0x3fc] ss:$36 sps:$4 sm:$0xff]   ;;  %v4214_v38 = vld [vmem:[%s6503_s1 + $0x3f0] ss:$36 sps:$4 sm:$0xff]   ;;  %s4134_s27 = smul.u32 24, %s6840_s16  ;;  %s4382_s24 = smov 32  }
  0x19   : > { %1122 = vmatpush1.bf16.msra.mxu0 %v4178_v14  ;;  %1173 = vmatpush1.bf16.msra.mxu1 %v4179_v15  ;;  %v4215_v39 = vld [vmem:[%s6503_s1 + $0x3f8] ss:$36 sps:$4 sm:$0xff]   ;;  %v4216_v40 = vld [vmem:[%s6503_s1 + $0x3ac] ss:$36 sps:$4 sm:$0xff]   ;;  %v4222_v44 = vld [vmem:[%s6503_s1 + $0x364] ss:$36 sps:$4 sm:$0xff]  }
  0x1a   : > { %1123 = vmatprep.subr.bf16.mxu0 %v4180_v16  ;;  %1174 = vmatprep.subr.bf16.mxu1 %v4182_v17  ;;  %v4218_v41 = vld [vmem:[%s6503_s1 + $0x3b4] ss:$36 sps:$4 sm:$0xff]   ;;  %v4220_v42 = vld [vmem:[%s6503_s1 + $0x3a8] ss:$36 sps:$4 sm:$0xff]   ;;  %s4568_s12 = scalar_lea.vmem %s6502_s0, %s4134_s27  ;;  %v4226_v46 = vld [vmem:[%s6503_s1 + $0x360] ss:$36 sps:$4 sm:$0xff]  }
  0x1b   : > { %v4221_v43 = vld [vmem:[%s6503_s1 + $0x3b0] ss:$36 sps:$4 sm:$0xff]   ;;  %v4577_v47 = vld [vmem:[%s4568_s12 + $0x4] ss:$8 sps:$4 sm:$0xff]   ;;  %v4228_v49 = vld [vmem:[%s6503_s1 + $0x31c] ss:$36 sps:$4 sm:$0xff]  }
  0x1c   : > { %v4224_v45 = vld [vmem:[%s6503_s1 + $0x36c] ss:$36 sps:$4 sm:$0xff]   ;;  %v4230_v50 = vld [vmem:[%s6503_s1 + $0x324] ss:$36 sps:$4 sm:$0xff]   ;;  %1147 = vmatprep.mubr.bf16.mxu0 %v4577_v47  ;;  %1198 = vmatprep.mubr.bf16.mxu1 %v4577_v47  ;;  %v4232_v51 = vld [vmem:[%s6503_s1 + $0x318] ss:$36 sps:$4 sm:$0xff]  }
  0x1d   : > { %1124 = vmatpush1.bf16.msra.mxu0 %v4184_v18  ;;  %1175 = vmatpush1.bf16.msra.mxu1 %v4185_v19  ;;  %v4227_v48 = vld [vmem:[%s6503_s1 + $0x368] ss:$36 sps:$4 sm:$0xff]   ;;  %v4233_v52 = vld [vmem:[%s6503_s1 + $0x320] ss:$36 sps:$4 sm:$0xff]   ;;  %v4234_v53 = vld [vmem:[%s6503_s1 + $0x2d4] ss:$36 sps:$4 sm:$0xff]  }
  0x1e   : > { %1125 = vmatprep.subr.bf16.mxu0 %v4186_v20  ;;  %1176 = vmatprep.subr.bf16.mxu1 %v4188_v21  ;;  %v4236_v54 = vld [vmem:[%s6503_s1 + $0x2dc] ss:$36 sps:$4 sm:$0xff]   ;;  %v4238_v55 = vld [vmem:[%s6503_s1 + $0x2d0] ss:$36 sps:$4 sm:$0xff]   ;;  %v4244_v59 = vld [vmem:[%s6503_s1 + $0x288] ss:$36 sps:$4 sm:$0xff]  }
  0x1f   : > { %v4239_v56 = vld [vmem:[%s6503_s1 + $0x2d8] ss:$36 sps:$4 sm:$0xff]   ;;  %v4240_v57 = vld [vmem:[%s6503_s1 + $0x28c] ss:$36 sps:$4 sm:$0xff]   ;;  %v4246_v61 = vld [vmem:[%s6503_s1 + $0x244] ss:$36 sps:$4 sm:$0xff]  }
  0x20   : > { %v4242_v58 = vld [vmem:[%s6503_s1 + $0x294] ss:$36 sps:$4 sm:$0xff]   ;;  %v4248_v62 = vld [vmem:[%s6503_s1 + $0x24c] ss:$36 sps:$4 sm:$0xff]   ;;  %v4250_v63 = vld [vmem:[%s6503_s1 + $0x240] ss:$36 sps:$4 sm:$0xff]  }
  0x21   : > { %1126 = vmatpush1.bf16.msra.mxu0 %v4190_v22  ;;  %1177 = vmatpush1.bf16.msra.mxu1 %v4191_v23  ;;  %v4245_v60 = vld [vmem:[%s6503_s1 + $0x290] ss:$36 sps:$4 sm:$0xff]   ;;  %v4251_v0 = vld [vmem:[%s6503_s1 + $0x248] ss:$36 sps:$4 sm:$0xff]   ;;  %v4260_v10 = vld [vmem:[%s6503_s1 + $0x1c0] ss:$36 sps:$4 sm:$0xff]  }
  0x22   : > { %1127 = vmatprep.subr.bf16.mxu0 %v4192_v24  ;;  %1178 = vmatprep.subr.bf16.mxu1 %v4194_v25  ;;  %v201_v1 = vld [vmem:[%s4568_s12 + $0x10] sm:$0xff]  ;;  %v4640_v4 = vld [vmem:[%s4568_s12] ss:$8 sps:$4 sm:$0xff]   ;;  %v4266_v15 = vld [vmem:[%s6503_s1 + $0x178] ss:$36 sps:$4 sm:$0xff]   ;;  %s4383_s25 = smov 97  }
  0x23   : > { %v4259_v2 = vld [vmem:[%s6503_s1 + $0x20c] ss:$36 sps:$4 sm:$0xff]   ;;  %v4265_v3 = vld [vmem:[%s6503_s1 + $0x214] ss:$36 sps:$4 sm:$0xff]   ;;  %v4642_v5 = vcombine.high %v201_v1, %v201_v1  ;;  %v4262_v8 = vld [vmem:[%s6503_s1 + $0x1c4] ss:$36 sps:$4 sm:$0xff]   ;;  %v4672_v14 = vcombine.low %v201_v1, %v201_v1 }
  0x24   : > { %v4257_v6 = vld [vmem:[%s6503_s1 + $0x208] ss:$36 sps:$4 sm:$0xff]   ;;  %v4263_v7 = vld [vmem:[%s6503_s1 + $0x210] ss:$36 sps:$4 sm:$0xff]   ;;  %v4268_v12 = vld [vmem:[%s6503_s1 + $0x17c] ss:$36 sps:$4 sm:$0xff]  }
  0x25   : > { %1128 = vmatpush1.bf16.msra.mxu0 %v4196_v26  ;;  %1179 = vmatpush1.bf16.msra.mxu1 %v4197_v27  ;;  %v4271_v9 = vld [vmem:[%s6503_s1 + $0x1cc] ss:$36 sps:$4 sm:$0xff]   ;;  %v4277_v13 = vld [vmem:[%s6503_s1 + $0x184] ss:$36 sps:$4 sm:$0xff]   ;;  %v4274_v17 = vld [vmem:[%s6503_s1 + $0x134] ss:$36 sps:$4 sm:$0xff]  }
  0x26   : > { %1129 = vmatprep.subr.bf16.mxu0 %v4198_v28  ;;  %1180 = vmatprep.subr.bf16.mxu1 %v4200_v29  ;;  %v4269_v11 = vld [vmem:[%s6503_s1 + $0x1c8] ss:$36 sps:$4 sm:$0xff]   ;;  %v4275_v16 = vld [vmem:[%s6503_s1 + $0x180] ss:$36 sps:$4 sm:$0xff]   ;;  %v4272_v19 = vld [vmem:[%s6503_s1 + $0x130] ss:$36 sps:$4 sm:$0xff]  }
  0x27   : > { %v4283_v18 = vld [vmem:[%s6503_s1 + $0x13c] ss:$36 sps:$4 sm:$0xff]   ;;  %v4280_v21 = vld [vmem:[%s6503_s1 + $0xec] ss:$36 sps:$4 sm:$0xff]   ;;  %v4289_v22 = vld [vmem:[%s6503_s1 + $0xf4] ss:$36 sps:$4 sm:$0xff]  }
  0x28   : > { %v4281_v20 = vld [vmem:[%s6503_s1 + $0x138] ss:$36 sps:$4 sm:$0xff]   ;;  %v4278_v23 = vld [vmem:[%s6503_s1 + $0xe8] ss:$36 sps:$4 sm:$0xff]   ;;  %v4287_v24 = vld [vmem:[%s6503_s1 + $0xf0] ss:$36 sps:$4 sm:$0xff]  }
  0x29   : > { %1130 = vmatpush1.bf16.msra.mxu0 %v4202_v30  ;;  %1181 = vmatpush1.bf16.msra.mxu1 %v4203_v31  ;;  %v4286_v25 = vld [vmem:[%s6503_s1 + $0xa4] ss:$36 sps:$4 sm:$0xff]   ;;  %v4295_v26 = vld [vmem:[%s6503_s1 + $0xac] ss:$36 sps:$4 sm:$0xff]   ;;  %v4292_v29 = vld [vmem:[%s6503_s1 + $0x5c] ss:$36 sps:$4 sm:$0xff]  }
  0x2a   : > { %1131 = vmatprep.subr.bf16.mxu0 %v4204_v32  ;;  %1182 = vmatprep.subr.bf16.mxu1 %v4206_v33  ;;  %v4284_v27 = vld [vmem:[%s6503_s1 + $0xa0] ss:$36 sps:$4 sm:$0xff]   ;;  %v4293_v28 = vld [vmem:[%s6503_s1 + $0xa8] ss:$36 sps:$4 sm:$0xff]   ;;  %v4290_v31 = vld [vmem:[%s6503_s1 + $0x58] ss:$36 sps:$4 sm:$0xff]  }
  0x2b   : > { %v4301_v30 = vld [vmem:[%s6503_s1 + $0x64] ss:$36 sps:$4 sm:$0xff]   ;;  %v4298_v33 = vld [vmem:[%s6503_s1 + $0x14] ss:$36 sps:$4 sm:$0xff]   ;;  %s4384_s26 = smov 63   ;;  %s4385_s27 = smov 95  }
  0x2c   : > { %v4299_v32 = vld [vmem:[%s6503_s1 + $0x60] ss:$36 sps:$4 sm:$0xff]   ;;  %s4386_s28 = smov 65   ;;  %s4387_s29 = smov 31   ;;  %vm2687_vm8 = vcmask 515072  }
  0x2d   : > { %1132 = vmatpush2.bf16.msra.mxu0 %v4208_v34  ;;  %1183 = vmatpush2.bf16.msra.mxu1 %v4209_v35  ;;  %v4307_v34 = vld [vmem:[%s6503_s1 + $0x1c] ss:$36 sps:$4 sm:$0xff]   ;;  %v4296_v35 = vld [vmem:[%s6503_s1 + $0x10] ss:$36 sps:$4 sm:$0xff]   ;;  %v4349_v1 = vld [vmem:[%s6503_s1 + $0x2a4] ss:$36 sps:$4 sm:$0xff]  }
  0x2e   : > { %1133 = vmatprep.subr.bf16.mxu0 %v4210_v36  ;;  %1184 = vmatprep.subr.bf16.mxu1 %v4212_v37  ;;  %v4305_v36 = vld [vmem:[%s6503_s1 + $0x18] ss:$36 sps:$4 sm:$0xff]   ;;  %v4304_v37 = vld [vmem:[%s6503_s1 + $0x44c] ss:$36 sps:$4 sm:$0xff]   ;;  %s4388_s30 = smov 33   ;;  %s4105_s23 = sshll.u32 %s6840_s16, 7 }
  0x31   : > { %1134 = vmatpush2.bf16.msra.mxu0 %v4214_v38  ;;  %1185 = vmatpush2.bf16.msra.mxu1 %v4215_v39  ;;  %v4313_v38 = vld [vmem:[%s6503_s1 + $0x454] ss:$36 sps:$4 sm:$0xff]   ;;  %v4302_v39 = vld [vmem:[%s6503_s1 + $0x448] ss:$36 sps:$4 sm:$0xff]  }
  0x32   : > { %1135 = vmatprep.subr.bf16.mxu0 %v4216_v40  ;;  %1186 = vmatprep.subr.bf16.mxu1 %v4218_v41  ;;  %v4311_v40 = vld [vmem:[%s6503_s1 + $0x450] ss:$36 sps:$4 sm:$0xff]   ;;  %v4310_v41 = vld [vmem:[%s6503_s1 + $0x404] ss:$36 sps:$4 sm:$0xff]  }
  0x35   : > { %1136 = vmatpush2.bf16.msra.mxu0 %v4220_v42  ;;  %1187 = vmatpush2.bf16.msra.mxu1 %v4221_v43  ;;  %v4319_v42 = vld [vmem:[%s6503_s1 + $0x40c] ss:$36 sps:$4 sm:$0xff]   ;;  %v4308_v43 = vld [vmem:[%s6503_s1 + $0x400] ss:$36 sps:$4 sm:$0xff]  }
  0x36   : > { %1137 = vmatprep.subr.bf16.mxu0 %v4222_v44  ;;  %1188 = vmatprep.subr.bf16.mxu1 %v4224_v45  ;;  %v4317_v44 = vld [vmem:[%s6503_s1 + $0x408] ss:$36 sps:$4 sm:$0xff]   ;;  %v4316_v45 = vld [vmem:[%s6503_s1 + $0x3bc] ss:$36 sps:$4 sm:$0xff]  }
  0x39   : > { %1138 = vmatpush2.bf16.msra.mxu0 %v4226_v46  ;;  %1189 = vmatpush2.bf16.msra.mxu1 %v4227_v48  ;;  %v4325_v46 = vld [vmem:[%s6503_s1 + $0x3c4] ss:$36 sps:$4 sm:$0xff]   ;;  %v4314_v48 = vld [vmem:[%s6503_s1 + $0x3b8] ss:$36 sps:$4 sm:$0xff]  }
  0x3a   : > { %1139 = vmatprep.subr.bf16.mxu0 %v4228_v49  ;;  %1190 = vmatprep.subr.bf16.mxu1 %v4230_v50  ;;  %v4323_v49 = vld [vmem:[%s6503_s1 + $0x3c0] ss:$36 sps:$4 sm:$0xff]   ;;  %v4322_v50 = vld [vmem:[%s6503_s1 + $0x374] ss:$36 sps:$4 sm:$0xff]  }
  0x3d   : > { %1140 = vmatpush2.bf16.msra.mxu0 %v4232_v51  ;;  %1191 = vmatpush2.bf16.msra.mxu1 %v4233_v52  ;;  %v4320_v51 = vld [vmem:[%s6503_s1 + $0x370] ss:$36 sps:$4 sm:$0xff]  }
  0x3e   : > { %1141 = vmatprep.subr.bf16.mxu0 %v4234_v53  ;;  %1192 = vmatprep.subr.bf16.mxu1 %v4236_v54  ;;  %v4328_v52 = vld [vmem:[%s6503_s1 + $0x32c] ss:$36 sps:$4 sm:$0xff]   ;;  %v4331_v53 = vld [vmem:[%s6503_s1 + $0x37c] ss:$36 sps:$4 sm:$0xff]  }
  0x3f   : > { %v4326_v54 = vld [vmem:[%s6503_s1 + $0x328] ss:$36 sps:$4 sm:$0xff]  }
  0x41   : > { %1142 = vmatpush2.bf16.msra.mxu0 %v4238_v55  ;;  %1193 = vmatpush2.bf16.msra.mxu1 %v4239_v56  ;;  %v4329_v55 = vld [vmem:[%s6503_s1 + $0x378] ss:$36 sps:$4 sm:$0xff]   ;;  %v4334_v56 = vld [vmem:[%s6503_s1 + $0x2e4] ss:$36 sps:$4 sm:$0xff]  }
  0x42   : > { %1143 = vmatprep.subr.bf16.mxu0 %v4240_v57  ;;  %1194 = vmatprep.subr.bf16.mxu1 %v4242_v58  ;;  %v4337_v57 = vld [vmem:[%s6503_s1 + $0x334] ss:$36 sps:$4 sm:$0xff]   ;;  %v4332_v58 = vld [vmem:[%s6503_s1 + $0x2e0] ss:$36 sps:$4 sm:$0xff]  }
  0x45   : > { %1144 = vmatpush2.bf16.msra.mxu0 %v4244_v59  ;;  %1195 = vmatpush2.bf16.msra.mxu1 %v4245_v60  ;;  %v4335_v59 = vld [vmem:[%s6503_s1 + $0x330] ss:$36 sps:$4 sm:$0xff]   ;;  %v4340_v60 = vld [vmem:[%s6503_s1 + $0x29c] ss:$36 sps:$4 sm:$0xff]  }
  0x46   : > { %1145 = vmatprep.subr.bf16.mxu0 %v4246_v61  ;;  %1196 = vmatprep.subr.bf16.mxu1 %v4248_v62  ;;  %v4343_v61 = vld [vmem:[%s6503_s1 + $0x2ec] ss:$36 sps:$4 sm:$0xff]   ;;  %v4338_v62 = vld [vmem:[%s6503_s1 + $0x298] ss:$36 sps:$4 sm:$0xff]  }
  0x49   : > { %1146 = vmatpush2.bf16.msra.mxu0 %v4250_v63  ;;  %1197 = vmatpush2.bf16.msra.mxu1 %v4251_v0  ;;  %v4341_v63 = vld [vmem:[%s6503_s1 + $0x2e8] ss:$36 sps:$4 sm:$0xff]   ;;  %v4346_v0 = vld [vmem:[%s6503_s1 + $0x254] ss:$36 sps:$4 sm:$0xff]  }
  0x4a   : > { %1217 = vmatprep.subr.bf16.mxu0 %v4259_v2  ;;  %1268 = vmatprep.subr.bf16.mxu1 %v4265_v3  ;;  %v4344_v2 = vld [vmem:[%s6503_s1 + $0x250] ss:$36 sps:$4 sm:$0xff]   ;;  %v4347_v3 = vld [vmem:[%s6503_s1 + $0x2a0] ss:$36 sps:$4 sm:$0xff]  }
  0x4c   : > { %1148 = vmatmul.mubr.bf16.vlgmr.msra.gmra.mxu0 %v4640_v4  ;;  %1199 = vmatmul.mubr.bf16.vlgmr.msra.gmra.mxu1 %v4640_v4 }
  0x4d   : > { %1157 = vmatprep.mubr.bf16.mxu0 %v4642_v5  ;;  %1208 = vmatprep.mubr.bf16.mxu1 %v4642_v5 }
  0x4e   : > { %1218 = vmatpush1.bf16.msra.mxu0 %v4257_v6  ;;  %1269 = vmatpush1.bf16.msra.mxu1 %v4263_v7  ;;  %v4352_v6 = vld [vmem:[%s6503_s1 + $0x25c] ss:$36 sps:$4 sm:$0xff]  }
  0x4f   : > { %1219 = vmatprep.subr.bf16.mxu0 %v4262_v8  ;;  %1270 = vmatprep.subr.bf16.mxu1 %v4271_v9  ;;  %v4350_v7 = vld [vmem:[%s6503_s1 + $0x258] ss:$36 sps:$4 sm:$0xff]  }
  0x50   : > { %v4353_v8 = vld [vmem:[%s6503_s1 + $0x458] ss:$36 sps:$4 sm:$0xff]  }
  0x51   : > { %v4354_v9 = vld [vmem:[%s6503_s1 + $0x218] ss:$36 sps:$4 sm:$0xff]  }
  0x52   : > { %1220 = vmatpush1.bf16.msra.mxu0 %v4260_v10  ;;  %1271 = vmatpush1.bf16.msra.mxu1 %v4269_v11  ;;  %v4355_v10 = vld [vmem:[%s6503_s1 + $0x410] ss:$36 sps:$4 sm:$0xff]   ;;  %v4357_v11 = vld [vmem:[%s6503_s1 + $0x3c8] ss:$36 sps:$4 sm:$0xff]  }
  0x53   : > { %1221 = vmatprep.subr.bf16.mxu0 %v4268_v12  ;;  %1272 = vmatprep.subr.bf16.mxu1 %v4277_v13  ;;  %v4358_v12 = vld [vmem:[%s6503_s1 + $0x188] ss:$36 sps:$4 sm:$0xff]   ;;  %v4359_v13 = vld [vmem:[%s6503_s1 + $0x380] ss:$36 sps:$4 sm:$0xff]  }
  0x54   : > { %1158 = vmatmul.mubr.bf16.gmra.mxu0 %v4672_v14  ;;  %1209 = vmatmul.mubr.bf16.gmra.mxu1 %v4672_v14 }
  0x55   : > { %1249 = vmatprep.mubr.bf16.mxu0 %v4577_v47  ;;  %1300 = vmatprep.mubr.bf16.mxu1 %v4577_v47 }
  0x56   : > { %1222 = vmatpush1.bf16.msra.mxu0 %v4266_v15  ;;  %1273 = vmatpush1.bf16.msra.mxu1 %v4275_v16  ;;  %v4360_v15 = vld [vmem:[%s6503_s1 + $0x140] ss:$36 sps:$4 sm:$0xff]   ;;  %v1367_v16 = vlaneseq }
  0x57   : > { %1223 = vmatprep.subr.bf16.mxu0 %v4274_v17  ;;  %1274 = vmatprep.subr.bf16.mxu1 %v4283_v18  ;;  %v4361_v17 = vld [vmem:[%s6503_s1 + $0x338] ss:$36 sps:$4 sm:$0xff]  }
  0x58   : > { %v4362_v18 = vld [vmem:[%s6503_s1 + $0xf8] ss:$36 sps:$4 sm:$0xff]  }
  0x5a   : > { %1224 = vmatpush1.bf16.msra.mxu0 %v4272_v19  ;;  %1275 = vmatpush1.bf16.msra.mxu1 %v4281_v20  ;;  %v4877_v19 = vand.u32 127, %v1367_v16  ;;  %v4363_v20 = vld [vmem:[%s6503_s1 + $0x2f0] ss:$36 sps:$4 sm:$0xff]  }
  0x5b   : > { %1225 = vmatprep.subr.bf16.mxu0 %v4280_v21  ;;  %1276 = vmatprep.subr.bf16.mxu1 %v4289_v22  ;;  %v4364_v21 = vld [vmem:[%s6503_s1 + $0xb0] ss:$36 sps:$4 sm:$0xff]  }
  0x5c   : > { %v1381_v22 = vand.u32 31, %v4877_v19 }
  0x5e   : > { %1226 = vmatpush1.bf16.msra.mxu0 %v4278_v23  ;;  %1277 = vmatpush1.bf16.msra.mxu1 %v4287_v24  ;;  %v4365_v23 = vld [vmem:[%s6503_s1 + $0x2a8] ss:$36 sps:$4 sm:$0xff]   ;;  %vm1512_vm0 = vcmp.ne.s32.totalorder %v1381_v22, 31  ;;  %vm1593_vm2 = vcmp.ne.s32.totalorder %v1381_v22, 0 }
  0x5f   : > { %1227 = vmatprep.subr.bf16.mxu0 %v4286_v25  ;;  %1278 = vmatprep.subr.bf16.mxu1 %v4295_v26  ;;  %v4366_v24 = vld [vmem:[%s6503_s1 + $0x68] ss:$36 sps:$4 sm:$0xff]  }
  0x62   : > { %1228 = vmatpush1.bf16.msra.mxu0 %v4284_v27  ;;  %1279 = vmatpush1.bf16.msra.mxu1 %v4293_v28  ;;  %v1370_v27 = vadd.s32 256, %v4877_v19  ;;  %v4367_v28 = vld [vmem:[%s6503_s1 + $0x260] ss:$36 sps:$4 sm:$0xff]  }
  0x63   : > { %1229 = vmatprep.subr.bf16.mxu0 %v4292_v29  ;;  %1280 = vmatprep.subr.bf16.mxu1 %v4301_v30  ;;  %v4368_v29 = vld [vmem:[%s6503_s1 + $0x20] ss:$36 sps:$4 sm:$0xff]  }
  0x66   : > { %1230 = vmatpush1.bf16.msra.mxu0 %v4290_v31  ;;  %1281 = vmatpush1.bf16.msra.mxu1 %v4299_v32 }
  0x67   : > { %1231 = vmatprep.subr.bf16.mxu0 %v4298_v33  ;;  %1282 = vmatprep.subr.bf16.mxu1 %v4307_v34  ;;  %v6507_v34 = vmov 0.0  }
  0x6a   : > { %1232 = vmatpush1.bf16.msra.mxu0 %v4296_v35  ;;  %1283 = vmatpush1.bf16.msra.mxu1 %v4305_v36  ;;  %v4910_v35 = vsel %vm1512_vm0, 1.0, %v6507_v34  ;;  %v1395_v36 = vand.u32 31, %v1370_v27 }
  0x6b   : > { %1233 = vmatprep.subr.bf16.mxu0 %v4304_v37  ;;  %1284 = vmatprep.subr.bf16.mxu1 %v4313_v38 }
  0x6c   : > { %vm1514_vm1 = vcmp.ne.s32.totalorder %v1395_v36, 31  ;;  %vm1595_vm3 = vcmp.ne.s32.totalorder %v1395_v36, 0 }
  0x6e   : > { %1234 = vmatpush2.bf16.msra.mxu0 %v4302_v39  ;;  %1285 = vmatpush2.bf16.msra.mxu1 %v4311_v40 }
  0x6f   : > { %1235 = vmatprep.subr.bf16.mxu0 %v4310_v41  ;;  %1286 = vmatprep.subr.bf16.mxu1 %v4319_v42 }
  0x72   : > { %1236 = vmatpush2.bf16.msra.mxu0 %v4308_v43  ;;  %1287 = vmatpush2.bf16.msra.mxu1 %v4317_v44  ;;  %v4932_v44 = vsel %vm1514_vm1, 1.0, %v6507_v34  ;;  %vm3535_vm1 = vcmask 719872  }
  0x73   : > { %1237 = vmatprep.subr.bf16.mxu0 %v4316_v45  ;;  %1288 = vmatprep.subr.bf16.mxu1 %v4325_v46 }
  0x76   : > { %1238 = vmatpush2.bf16.msra.mxu0 %v4314_v48  ;;  %1289 = vmatpush2.bf16.msra.mxu1 %v4323_v49  ;;  %v4940_v49 = vsel %vm1593_vm2, 1.0, %v6507_v34  ;;  %vm2506_vm2 = vcmask 523264  }
  0x77   : > { %1239 = vmatprep.subr.bf16.mxu0 %v4322_v50  ;;  %1290 = vmatprep.subr.bf16.mxu1 %v4331_v53 }
  0x7a   : > { %1240 = vmatpush2.bf16.msra.mxu0 %v4320_v51  ;;  %1291 = vmatpush2.bf16.msra.mxu1 %v4329_v55  ;;  %v4947_v51 = vsel %vm1595_vm3, 1.0, %v6507_v34  ;;  %vm2325_vm3 = vcmask 531456  }
  0x7b   : > { %1241 = vmatprep.subr.bf16.mxu0 %v4328_v52  ;;  %1292 = vmatprep.subr.bf16.mxu1 %v4337_v57  ;;  %v1371_v52 = vadd.s32 384, %v4877_v19 }
  0x7d   : > { %v1402_v53 = vand.u32 31, %v1371_v52 }
  0x7e   : > { %1242 = vmatpush2.bf16.msra.mxu0 %v4326_v54  ;;  %1293 = vmatpush2.bf16.msra.mxu1 %v4335_v59  ;;  %v1369_v54 = vadd.s32 128, %v4877_v19 }
  0x7f   : > { %1243 = vmatprep.subr.bf16.mxu0 %v4334_v56  ;;  %1294 = vmatprep.subr.bf16.mxu1 %v4343_v61  ;;  %vm1515_vm4 = vcmp.ne.s32.totalorder %v1402_v53, 31  ;;  %vm1596_vm6 = vcmp.ne.s32.totalorder %v1402_v53, 0 }
  0x80   : > { %v1388_v55 = vand.u32 31, %v1369_v54  ;;  %v4967_v56 = vsel %vm1515_vm4, 1.0, %v6507_v34  ;;  %vm2144_vm4 = vcmask 777216  }
  0x82   : > { %1244 = vmatpush2.bf16.msra.mxu0 %v4332_v58  ;;  %1295 = vmatpush2.bf16.msra.mxu1 %v4341_v63  ;;  %vm1594_vm5 = vcmp.ne.s32.totalorder %v1388_v55, 0  ;;  %vm1513_vm7 = vcmp.ne.s32.totalorder %v1388_v55, 31 }
  0x83   : > { %1245 = vmatprep.subr.bf16.mxu0 %v4340_v60  ;;  %1296 = vmatprep.subr.bf16.mxu1 %v4349_v1  ;;  %v4974_v58 = vsel %vm1594_vm5, 1.0, %v6507_v34  ;;  %v4981_v60 = vsel %vm1596_vm6, 1.0, %v6507_v34  ;;  %v4984_v61 = vsel %vm1513_vm7, 1.0, %v6507_v34  ;;  %vm1963_vm5 = vcmask 785408  }
  0x84   : > { %vm1782_vm6 = vcmask 793600  }
  0x86   : > { %1246 = vmatpush2.bf16.msra.mxu0 %v4338_v62  ;;  %1297 = vmatpush2.bf16.msra.mxu1 %v4347_v3 }
  0x87   : > { %1247 = vmatprep.subr.bf16.mxu0 %v4346_v0  ;;  %1298 = vmatprep.subr.bf16.mxu1 %v4352_v6 }
  0x8a   : > { %1248 = vmatpush2.bf16.msra.mxu0 %v4344_v2  ;;  %1299 = vmatpush2.bf16.msra.mxu1 %v4350_v7 }
  0x8b   : > { %4106 = vmatprep.subr.bf16.mxu0 %v4353_v8 }
  0x8d   : > { %1250 = vmatmul.mubr.bf16.vlgmr.msra.gmra.mxu0 %v4640_v4  ;;  %1301 = vmatmul.mubr.bf16.vlgmr.msra.gmra.mxu1 %v4640_v4 }
  0x8e   : > { %1259 = vmatprep.mubr.bf16.mxu0 %v4642_v5  ;;  %1310 = vmatprep.mubr.bf16.mxu1 %v4642_v5 }
  0x8f   : > { %4107 = vmatpush3.bf16.msra.mxu0 %v4354_v9 }
  0x90   : > { %4108 = vmatprep.subr.bf16.mxu0 %v4355_v10 }
  0x95   : > { %1260 = vmatmul.mubr.bf16.gmra.mxu0 %v4672_v14  ;;  %1311 = vmatmul.mubr.bf16.gmra.mxu1 %v4672_v14 }
  0x96   : > { %1351 = vmatprep.mubr.bf16.mxu0 %v4577_v47  ;;  %v4356_v47 = vld [vmem:[%s6503_s1 + $0x1d0] ss:$36 sps:$4 sm:$0xff]  }
  0x97   : > { %4109 = vmatpush3.bf16.msra.mxu0 %v4356_v47 }
  0x98   : > { %4110 = vmatprep.subr.bf16.mxu0 %v4357_v11 }
  0x9b   : > { %4111 = vmatpush3.bf16.msra.mxu0 %v4358_v12 }
  0x9c   : > { %4112 = vmatprep.subr.bf16.mxu0 %v4359_v13 }
  0x9f   : > { %4113 = vmatpush3.bf16.msra.mxu0 %v4360_v15 }
  0xa0   : > { %4114 = vmatprep.subr.bf16.mxu0 %v4361_v17 }
  0xa3   : > { %4115 = vmatpush3.bf16.msra.mxu0 %v4362_v18 }
  0xa4   : > { %4116 = vmatprep.subr.bf16.mxu0 %v4363_v20 }
  0xa7   : > { %4117 = vmatpush3.bf16.msra.mxu0 %v4364_v21 }
  0xa8   : > { %4118 = vmatprep.subr.bf16.mxu0 %v4365_v23 }
  0xab   : > { %4119 = vmatpush3.bf16.msra.mxu0 %v4366_v24 }
  0xac   : > { %4120 = vmatprep.subr.bf16.mxu0 %v4367_v28 }
  0xaf   : > { %4121 = vmatpush3.bf16.msra.mxu0 %v4368_v29 }
  0xb2   : > { %1352 = vmatmul.mubr.bf16.vlgmr.msra.gmra.mxu0 %v4640_v4 }
  0xb3   : > { %1359 = vmatprep.mubr.bf16.mxu0 %v4642_v5 }
  0xba   : > { %1360 = vmatmul.mubr.bf16.gmra.mxu0 %v4672_v14 }
 0x10c   : > { %v1149_v25 = vpop.f32.mrf.mxu0  ;;  %v1200_v26 = vpop.f32.mrf.mxu1 }
 0x10d   : > { %2452 = vrot.lane.b32.xlu0 %v1149_v25, %s4379_s18  ;;  %1909 = vrot.lane.b32.xlu1 %v1149_v25, %s4380_s19  ;;  %v1539_v39 = vmul.f32 %v4910_v35, %v1149_v25  ;;  %v1541_v48 = vmul.f32 %v4932_v44, %v1200_v26  ;;  %v1620_v50 = vmul.f32 %v4940_v49, %v1149_v25 }
 0x10e   : > { %v4901_v30 = vpop.f32.mrf.mxu0  ;;  %v4903_v31 = vpop.f32.mrf.mxu1  ;;  %v1622_v14 = vmul.f32 %v4947_v51, %v1200_v26 }
 0x10f   : > { %v1542_v57 = vmul.f32 %v4967_v56, %v4903_v31  ;;  %v1621_v59 = vmul.f32 %v4974_v58, %v4901_v30  ;;  %v1623_v62 = vmul.f32 %v4981_v60, %v4903_v31  ;;  %v1540_v63 = vmul.f32 %v4984_v61, %v4901_v30 }
 0x110   : > { %v4905_v32 = vpop.f32.mrf.mxu0  ;;  %v4907_v33 = vpop.f32.mrf.mxu1 }
 0x111   : > { %2999 = vrot.lane.b32.xlu0 %v1200_v26, %s4382_s24  ;;  %1913 = vrot.lane.b32.xlu1 %v1200_v26, %s4380_s19  ;;  %v1548_v0 = vmul.f32 %v4910_v35, %v4905_v32  ;;  %v1550_v1 = vmul.f32 %v4932_v44, %v4907_v33  ;;  %v1631_v2 = vmul.f32 %v4947_v51, %v4907_v33 }
 0x112   : > { %v4914_v37 = vpop.f32.mrf.mxu0  ;;  %v4916_v38 = vpop.f32.mrf.mxu1  ;;  %v1629_v3 = vmul.f32 %v4940_v49, %v4905_v32 }
 0x113   : > { %v1549_v8 = vmul.f32 %v4984_v61, %v4914_v37  ;;  %v1551_v47 = vmul.f32 %v4967_v56, %v4916_v38  ;;  %v1630_v21 = vmul.f32 %v4974_v58, %v4914_v37  ;;  %v1632_v24 = vmul.f32 %v4981_v60, %v4916_v38 }
 0x114   : > { %v4920_v40 = vpop.f32.mrf.mxu0  ;;  %v4922_v41 = vpop.f32.mrf.mxu1 }
 0x115   : > { %2456 = vrot.lane.b32.xlu1 %v1200_v26, %s4379_s18  ;;  %1728 = vrot.lane.b32.xlu0 %v1539_v39, %s4383_s25  ;;  %v1557_v29 = vmul.f32 %v4910_v35, %v4920_v40 }
 0x116   : > { %v4927_v42 = vpop.f32.mrf.mxu0  ;;  %v4929_v43 = vpop.f32.mrf.mxu1 }
 0x118   : > { %v1163_v4 = vpop.f32.mrf.mxu0  ;;  %v1214_v45 = vpop.f32.mrf.mxu1 }
 0x119   : > { %2995 = vrot.lane.b32.xlu1 %v1149_v25, %s4382_s24  ;;  %1911 = vrot.lane.b32.xlu0 %v4901_v30, %s4380_s19 }
 0x11a   : > { %v1164_v5 = vpop.f32.mrf.mxu0  ;;  %v1215_v46 = vpop.f32.mrf.mxu1 }
 0x11d   : > { %1732 = vrot.lane.b32.xlu1 %v1541_v48, %s4383_s25  ;;  %1915 = vrot.lane.b32.xlu0 %v4903_v31, %s4380_s19 }
 0x121   : > { %2633 = vrot.lane.b32.xlu1 %v1620_v50, %s4384_s26  ;;  %2090 = vrot.lane.b32.xlu0 %v1620_v50, %s4385_s27 }
 0x125   : > { %2271 = vrot.lane.b32.xlu1 %v1539_v39, %s4386_s28  ;;  %2094 = vrot.lane.b32.xlu0 %v1622_v14, %s4385_s27 }
 0x129   : > { %3180 = vrot.lane.b32.xlu1 %v1622_v14, %s4387_s29  ;;  %2637 = vrot.lane.b32.xlu0 %v1622_v14, %s4384_s26 }
 0x12d   : > { %2997 = vrot.lane.b32.xlu1 %v4901_v30, %s4382_s24  ;;  %2454 = vrot.lane.b32.xlu0 %v4901_v30, %s4379_s18 }
 0x131   : > { %3001 = vrot.lane.b32.xlu1 %v4903_v31, %s4382_s24  ;;  %2458 = vrot.lane.b32.xlu0 %v4903_v31, %s4379_s18 }
 0x135   : > { %2818 = vrot.lane.b32.xlu1 %v1541_v48, %s4388_s30  ;;  %2275 = vrot.lane.b32.xlu0 %v1541_v48, %s4386_s28 }
 0x139   : > { %1734 = vrot.lane.b32.xlu1 %v1542_v57, %s4383_s25  ;;  %3176 = vrot.lane.b32.xlu0 %v1620_v50, %s4387_s29 }
 0x13d   : > { %2814 = vrot.lane.b32.xlu0 %v1539_v39, %s4388_s30  ;;  %2092 = vrot.lane.b32.xlu1 %v1621_v59, %s4385_s27 }
 0x141   : > { %2096 = vrot.lane.b32.xlu1 %v1623_v62, %s4385_s27  ;;  %1730 = vrot.lane.b32.xlu0 %v1540_v63, %s4383_s25 }
 0x145   : > { %2635 = vrot.lane.b32.xlu1 %v1621_v59, %s4384_s26  ;;  %1927 = vrot.lane.b32.xlu0 %v4905_v32, %s4380_s19 }
 0x149   : > { %2639 = vrot.lane.b32.xlu1 %v1623_v62, %s4384_s26  ;;  %1931 = vrot.lane.b32.xlu0 %v4907_v33, %s4380_s19 }
 0x14d   : > { %2470 = vrot.lane.b32.xlu1 %v4905_v32, %s4379_s18  ;;  %2474 = vrot.lane.b32.xlu0 %v4907_v33, %s4379_s18  ;;  %v5109_v30 = vpop.f32.mrf.mxu0 }
 0x14f   : > { %v5119_v36 = vpop.f32.mrf.mxu0 }
 0x150   : > { %6625 = vst [vmem:[#allocation13_spill] sm:$0xff] %v5119_v36 }
 0x151   : > { %2273 = vrot.lane.b32.xlu1 %v1540_v63, %s4386_s28  ;;  %3178 = vrot.lane.b32.xlu0 %v1621_v59, %s4387_s29  ;;  %v5130_v39 = vpop.f32.mrf.mxu0 }
 0x153   : > { %v5141_v5 = vpop.f32.mrf.mxu0 }
 0x154   : > { %6630 = vst [vmem:[#allocation18_spill] sm:$0xff] %v5141_v5 }
 0x155   : > { %2277 = vrot.lane.b32.xlu1 %v1542_v57, %s4386_s28  ;;  %3182 = vrot.lane.b32.xlu0 %v1623_v62, %s4387_s29  ;;  %v5148_v48 = vpop.f32.mrf.mxu0  ;;  %v1640_v62 = vmul.f32 %v4947_v51, %v4922_v41 }
 0x157   : > { %v5156_v53 = vpop.f32.mrf.mxu0 }
 0x159   : > { %3017 = vrot.lane.b32.xlu1 %v4907_v33, %s4382_s24  ;;  %3013 = vrot.lane.b32.xlu0 %v4905_v32, %s4382_s24  ;;  %v1559_v33 = vmul.f32 %v4932_v44, %v4922_v41  ;;  %v1265_v54 = vpop.f32.mrf.mxu0 }
 0x15d   : > { %2816 = vrot.lane.b32.xlu0 %v1540_v63, %s4388_s30  ;;  %1746 = vrot.lane.b32.xlu1 %v1548_v0, %s4383_s25  ;;  %v1266_v63 = vpop.f32.mrf.mxu0 }
 0x161   : > { %2820 = vrot.lane.b32.xlu0 %v1542_v57, %s4388_s30  ;;  %1750 = vrot.lane.b32.xlu1 %v1550_v1, %s4383_s25 }
 0x165   : > { %2289 = vrot.lane.b32.xlu0 %v1548_v0, %s4386_s28  ;;  %1929 = vrot.lane.b32.xlu1 %v4914_v37, %s4380_s19 }
 0x169   : > { %2112 = vrot.lane.b32.xlu0 %v1631_v2, %s4385_s27  ;;  %1933 = vrot.lane.b32.xlu1 %v4916_v38, %s4380_s19 }
 0x16d   : > { %3198 = vrot.lane.b32.xlu0 %v1631_v2, %s4387_s29  ;;  %2472 = vrot.lane.b32.xlu1 %v4914_v37, %s4379_s18 }
 0x171   : > { %3015 = vrot.lane.b32.xlu0 %v4914_v37, %s4382_s24  ;;  %2476 = vrot.lane.b32.xlu1 %v4916_v38, %s4379_s18  ;;  %v5121_v37 = vpop.f32.mrf.mxu1 }
 0x172   : > { %6626 = vst [vmem:[#allocation14_spill] sm:$0xff] %v5121_v37 }
 0x173   : > { %v5132_v4 = vpop.f32.mrf.mxu1 }
 0x175   : > { %3019 = vrot.lane.b32.xlu0 %v4916_v38, %s4382_s24  ;;  %2293 = vrot.lane.b32.xlu1 %v1550_v1, %s4386_s28  ;;  %v5143_v46 = vpop.f32.mrf.mxu1 }
 0x176   : > { %6631 = vst [vmem:[#allocation19_spill] sm:$0xff] %v5143_v46 }
 0x177   : > { %v5154_v52 = vpop.f32.mrf.mxu1 }
 0x178   : > { %6633 = vst [vmem:[#allocation21_spill] sm:$0xff] %v5154_v52 }
 0x179   : > { %2836 = vrot.lane.b32.xlu0 %v1550_v1, %s4388_s30  ;;  %2108 = vrot.lane.b32.xlu1 %v1629_v3, %s4385_s27  ;;  %v5161_v55 = vpop.f32.mrf.mxu1 }
 0x17a   : > { %6634 = vst [vmem:[#allocation22_spill] sm:$0xff] %v5161_v55 }
 0x17d   : > { %2651 = vrot.lane.b32.xlu0 %v1629_v3, %s4384_s26  ;;  %3194 = vrot.lane.b32.xlu1 %v1629_v3, %s4387_s29 }
 0x17f   : > { %v5044_v6 = vpop.permute.xlu0 %2452  ;;  %v5046_v7 = vpop.permute.xlu1 %1909 }
 0x181   : > { %2832 = vrot.lane.b32.xlu1 %v1548_v0, %s4388_s30  ;;  %1748 = vrot.lane.b32.xlu0 %v1549_v8, %s4383_s25  ;;  %v5169_v0 = vpop.f32.mrf.mxu1 }
 0x183   : > { %v5052_v9 = vpop.permute.xlu0 %2999  ;;  %v5054_v10 = vpop.permute.xlu1 %1913 }
 0x184   : > { %6616 = vst [vmem:[#allocation4_spill] sm:$0xff] %v5052_v9  ;;  %v1316_v1 = vpop.f32.mrf.mxu1 }
 0x185   : > { %2655 = vrot.lane.b32.xlu1 %v1631_v2, %s4384_s26  ;;  %1752 = vrot.lane.b32.xlu0 %v1551_v47, %s4383_s25 }
 0x187   : > { %v5060_v11 = vpop.permute.xlu1 %2456  ;;  %v5062_v12 = vpop.permute.xlu0 %1728 }
 0x188   : > { %6617 = vst [vmem:[#allocation5_spill] sm:$0xff] %v5060_v11 }
 0x189   : > { %2488 = vrot.lane.b32.xlu0 %v4920_v40, %s4379_s18  ;;  %1945 = vrot.lane.b32.xlu1 %v4920_v40, %s4380_s19 }
 0x18b   : > { %v5068_v13 = vpop.permute.xlu1 %2995  ;;  %v5070_v15 = vpop.permute.xlu0 %1911 }
 0x18c   : > { %6618 = vst [vmem:[#allocation6_spill] sm:$0xff] %v5068_v13 }
 0x18d   : > { %2291 = vrot.lane.b32.xlu0 %v1549_v8, %s4386_s28  ;;  %1949 = vrot.lane.b32.xlu1 %v4922_v41, %s4380_s19 }
 0x18f   : > { %v5075_v16 = vpop.permute.xlu1 %1732  ;;  %v5077_v17 = vpop.permute.xlu0 %1915 }
 0x190   : > { %6619 = vst [vmem:[#allocation7_spill] sm:$0xff] %v5077_v17 }
 0x191   : > { %2295 = vrot.lane.b32.xlu0 %v1551_v47, %s4386_s28  ;;  %2492 = vrot.lane.b32.xlu1 %v4922_v41, %s4379_s18 }
 0x193   : > { %v2634_v18 = vpop.permute.xlu1 %2633  ;;  %v5082_v20 = vpop.permute.xlu0 %2090 }
 0x195   : > { %3035 = vrot.lane.b32.xlu0 %v4922_v41, %s4382_s24  ;;  %2110 = vrot.lane.b32.xlu1 %v1630_v21, %s4385_s27 }
 0x197   : > { %v5089_v22 = vpop.permute.xlu1 %2271  ;;  %v5091_v23 = vpop.permute.xlu0 %2094 }
 0x199   : > { %2653 = vrot.lane.b32.xlu0 %v1630_v21, %s4384_s26  ;;  %2114 = vrot.lane.b32.xlu1 %v1632_v24, %s4385_s27 }
 0x19b   : > { %v5097_v25 = vpop.permute.xlu1 %3180  ;;  %v5099_v26 = vpop.permute.xlu0 %2637 }
 0x19c   : > { %6620 = vst [vmem:[#allocation8_spill] sm:$0xff] %v5097_v25  ;;  %6621 = vst [vmem:[#allocation9_spill] sm:$0xff] %v5099_v26 }
 0x19d   : > { %2657 = vrot.lane.b32.xlu0 %v1632_v24, %s4384_s26  ;;  %3196 = vrot.lane.b32.xlu1 %v1630_v21, %s4387_s29  ;;  %v1317_v21 = vpop.f32.mrf.mxu1 }
 0x19f   : > { %v5103_v27 = vpop.permute.xlu1 %2997  ;;  %v5105_v28 = vpop.permute.xlu0 %2454 }
 0x1a0   : > { %6622 = vst [vmem:[#allocation10_spill] sm:$0xff] %v5103_v27 }
 0x1a1   : > { %3200 = vrot.lane.b32.xlu1 %v1632_v24, %s4387_s29  ;;  %1764 = vrot.lane.b32.xlu0 %v1557_v29, %s4383_s25  ;;  %v1638_v24 = vmul.f32 %v4940_v49, %v4920_v40 }
 0x1a3   : > { %v5113_v31 = vpop.permute.xlu1 %3001  ;;  %v5115_v32 = vpop.permute.xlu0 %2458 }
 0x1a4   : > { %6623 = vst [vmem:[#allocation11_spill] sm:$0xff] %v5113_v31  ;;  %6624 = vst [vmem:[#allocation12_spill] sm:$0xff] %v5115_v32  ;;  %v1374_v32 = vadd.s32 768, %v4877_v19 }
 0x1a5   : > { %3031 = vrot.lane.b32.xlu1 %v4920_v40, %s4382_s24  ;;  %1768 = vrot.lane.b32.xlu0 %v1559_v33, %s4383_s25 }
 0x1a7   : > { %v5126_v35 = vpop.permute.xlu1 %2818  ;;  %v5128_v38 = vpop.permute.xlu0 %2275 }
 0x1a8   : > { %6627 = vst [vmem:[#allocation15_spill] sm:$0xff] %v5126_v35 }
 0x1a9   : > { %2834 = vrot.lane.b32.xlu1 %v1549_v8, %s4388_s30  ;;  %1947 = vrot.lane.b32.xlu0 %v4927_v42, %s4380_s19 }
 0x1ab   : > { %v5137_v44 = vpop.permute.xlu1 %1734  ;;  %v5139_v45 = vpop.permute.xlu0 %3176 }
 0x1ac   : > { %6628 = vst [vmem:[#allocation16_spill] sm:$0xff] %v5137_v44  ;;  %6629 = vst [vmem:[#allocation17_spill] sm:$0xff] %v5139_v45 }
 0x1ad   : > { %2838 = vrot.lane.b32.xlu1 %v1551_v47, %s4388_s30  ;;  %1951 = vrot.lane.b32.xlu0 %v4929_v43, %s4380_s19 }
 0x1af   : > { %v5150_v50 = vpop.permute.xlu0 %2814  ;;  %v5152_v14 = vpop.permute.xlu1 %2092 }
 0x1b0   : > { %6632 = vst [vmem:[#allocation20_spill] sm:$0xff] %v5150_v50  ;;  %v1373_v50 = vadd.s32 640, %v4877_v19 }
 0x1b1   : > { %2307 = vrot.lane.b32.xlu1 %v1557_v29, %s4386_s28  ;;  %2490 = vrot.lane.b32.xlu0 %v4927_v42, %s4379_s18 }
 0x1b3   : > { %v5163_v57 = vpop.permute.xlu1 %2096  ;;  %v5165_v59 = vpop.permute.xlu0 %1730 }
 0x1b4   : > { %6635 = vst [vmem:[#allocation23_spill] sm:$0xff] %v5163_v57  ;;  %v1372_v57 = vadd.s32 512, %v4877_v19 }
 0x1b5   : > { %2130 = vrot.lane.b32.xlu1 %v1640_v62, %s4385_s27  ;;  %2494 = vrot.lane.b32.xlu0 %v4929_v43, %s4379_s18 }
 0x1b7   : > { %v2636_v2 = vpop.permute.xlu1 %2635  ;;  %v5174_v3 = vpop.permute.xlu0 %1927 }
 0x1b8   : > { %v2689_v8 = vsel %vm2687_vm8, %v2636_v2, %v5099_v26  ;;  %v2688_v47 = vsel %vm2687_vm8, %v2634_v18, %v2636_v2 }
 0x1b9   : > { %3542 = vmatprep.subr.mxu1 %v2689_v8  ;;  %3216 = vrot.lane.b32.xlu1 %v1640_v62, %s4387_s29 }
 0x1ba   : > { %2311 = vrot.lane.b32.xlu0 %v1559_v33, %s4386_s28  ;;  %3543 = vmatpush1.msra.mxu1 %v2688_v47  ;;  %v1558_v47 = vmul.f32 %v4984_v61, %v4927_v42 }
 0x1bb   : > { %v5181_v41 = vpop.permute.xlu1 %2639  ;;  %v5183_v51 = vpop.permute.xlu0 %1931 }
 0x1bc   : > { %6636 = vst [vmem:[#allocation24_spill] sm:$0xff] %v5181_v41 }
 0x1bd   : > { %3033 = vrot.lane.b32.xlu1 %v4927_v42, %s4382_s24 }
 0x1be   : > { %2126 = vrot.lane.b32.xlu0 %v1638_v24, %s4385_s27 }
 0x1bf   : > { %v5190_v18 = vpop.permute.xlu1 %2470  ;;  %v5192_v54 = vpop.permute.xlu0 %2474 }
 0x1c0   : > { %6637 = vst [vmem:[#allocation25_spill] sm:$0xff] %v5192_v54 }
 0x1c1   : > { %3037 = vrot.lane.b32.xlu1 %v4929_v43, %s4382_s24 }
 0x1c2   : > { %3212 = vrot.lane.b32.xlu0 %v1638_v24, %s4387_s29 }
 0x1c3   : > { %v5197_v63 = vpop.permute.xlu1 %2273  ;;  %v5199_v1 = vpop.permute.xlu0 %3178 }
 0x1c4   : > { %6638 = vst [vmem:[#allocation26_spill] sm:$0xff] %v5199_v1 }
 0x1c5   : > { %2854 = vrot.lane.b32.xlu1 %v1559_v33, %s4388_s30  ;;  %v1639_v33 = vmul.f32 %v4974_v58, %v4927_v42  ;;  %v4122_v58 = vpop.f32.mrf.mxu0 }
 0x1c6   : > { %2850 = vrot.lane.b32.xlu0 %v1557_v29, %s4388_s30 }
 0x1c7   : > { %v5203_v40 = vpop.permute.xlu1 %2277  ;;  %v5205_v49 = vpop.permute.xlu0 %3182 }
 0x1c8   : > { %6639 = vst [vmem:[#allocation27_spill] sm:$0xff] %v5203_v40  ;;  %6640 = vst [vmem:[#allocation28_spill] sm:$0xff] %v5205_v49  ;;  %v4123_v34 = vpop.f32.mrf.mxu0  ;;  %v1409_v40 = vand.u32 31, %v1372_v57  ;;  %v6650_v57 = vmov 0.0  }
 0x1c9   : > { %2669 = vrot.lane.b32.xlu1 %v1638_v24, %s4384_s26  ;;  %v1641_v24 = vmul.f32 %v4981_v60, %v4929_v43  ;;  %v5239_v49 = vadd.f32 %v4123_v34, %v4122_v58 }
 0x1ca   : > { %2673 = vrot.lane.b32.xlu0 %v1640_v62, %s4384_s26  ;;  %v1560_v62 = vmul.f32 %v4967_v56, %v4929_v43  ;;  %v4125_v43 = vpop.f32.mrf.mxu0  ;;  %vm1516_vm9 = vcmp.ne.s32.totalorder %v1409_v40, 31  ;;  %vm1597_vm10 = vcmp.ne.s32.totalorder %v1409_v40, 0 }
 0x1cb   : > { %v5209_v2 = vpop.permute.xlu1 %3017  ;;  %v5211_v8 = vpop.permute.xlu0 %3013 }
 0x1cc   : > { %6641 = vst [vmem:[#allocation29_spill] sm:$0xff] %v5209_v2  ;;  %6642 = vst [vmem:[#allocation30_spill] sm:$0xff] %v5211_v8  ;;  %v4126_v60 = vpop.f32.mrf.mxu0  ;;  %v1416_v8 = vand.u32 31, %v1373_v50 }
 0x1cd   : > { %1766 = vrot.lane.b32.xlu1 %v1558_v47, %s4383_s25  ;;  %v5247_v17 = vadd.f32 %v4126_v60, %v4125_v43 }
 0x1ce   : > { %2128 = vrot.lane.b32.xlu0 %v1639_v33, %s4385_s27  ;;  %v4128_v60 = vpop.f32.mrf.mxu0  ;;  %vm1517_vm12 = vcmp.ne.s32.totalorder %v1416_v8, 31  ;;  %vm1598_vm15 = vcmp.ne.s32.totalorder %v1416_v8, 0 }
 0x1cf   : > { %v5219_v29 = vpop.permute.xlu0 %2816  ;;  %v5221_v21 = vpop.permute.xlu1 %1746  ;;  %6646 = vst [vmem:[#allocation34_spill] sm:$0xff] %v5247_v17  ;;  %v5322_v50 = vsel %vm1517_vm12, 1.0, %v6650_v57  ;;  %vm2868_vm12 = vcmask 269312  }
 0x1d0   : > { %6643 = vst [vmem:[#allocation31_spill] sm:$0xff] %v5219_v29  ;;  %v4129_v41 = vpop.f32.mrf.mxu0 }
 0x1d1   : > { %1770 = vrot.lane.b32.xlu1 %v1560_v62, %s4383_s25  ;;  %v5293_v29 = vadd.f32 %v4129_v41, %v4128_v60  ;;  %v1375_v41 = vadd.s32 896, %v4877_v19 }
 0x1d2   : > { %2132 = vrot.lane.b32.xlu0 %v1641_v24, %s4385_s27  ;;  %v4131_v35 = vpop.f32.mrf.mxu0 }
 0x1d3   : > { %v5229_v61 = vpop.permute.xlu0 %2820  ;;  %v5231_v42 = vpop.permute.xlu1 %1750  ;;  %6652 = vst [vmem:[#allocation39_spill] sm:$0xff] %v5293_v29 }
 0x1d4   : > { %6644 = vst [vmem:[#allocation32_spill] sm:$0xff] %v5229_v61  ;;  %v4132_v9 = vpop.f32.mrf.mxu0 }
 0x1d5   : > { %2309 = vrot.lane.b32.xlu1 %v1558_v47, %s4386_s28 }
 0x1d6   : > { %3214 = vrot.lane.b32.xlu0 %v1639_v33, %s4387_s29 }
 0x1d7   : > { %v5235_v31 = vpop.permute.xlu0 %2289  ;;  %v5237_v56 = vpop.permute.xlu1 %1929 }
 0x1d9   : > { %2313 = vrot.lane.b32.xlu1 %v1560_v62, %s4386_s28 }
 0x1da   : > { %3218 = vrot.lane.b32.xlu0 %v1641_v24, %s4387_s29 }
 0x1db   : > { %v5243_v61 = vpop.permute.xlu0 %2112  ;;  %v5245_v44 = vpop.permute.xlu1 %1933 }
 0x1dc   : > { %6645 = vst [vmem:[#allocation33_spill] sm:$0xff] %v5245_v44 }
 0x1dd   : > { %2671 = vrot.lane.b32.xlu1 %v1639_v33, %s4384_s26 }
 0x1de   : > { %2852 = vrot.lane.b32.xlu0 %v1558_v47, %s4388_s30  ;;  %v1423_v47 = vand.u32 31, %v1374_v32 }
 0x1df   : > { %v5252_v34 = vpop.permute.xlu0 %3198  ;;  %v5254_v58 = vpop.permute.xlu1 %2472 }
 0x1e0   : > { %vm1518_vm11 = vcmp.ne.s32.totalorder %v1423_v47, 31  ;;  %vm1599_vm14 = vcmp.ne.s32.totalorder %v1423_v47, 0 }
 0x1e1   : > { %2675 = vrot.lane.b32.xlu1 %v1641_v24, %s4384_s26  ;;  %v5290_v40 = vsel %vm1518_vm11, 1.0, %v6650_v57  ;;  %vm3049_vm11 = vcmask 261120  }
 0x1e2   : > { %2856 = vrot.lane.b32.xlu0 %v1560_v62, %s4388_s30  ;;  %v5274_v62 = vsel %vm1516_vm9, 1.0, %v6650_v57  ;;  %v5304_v27 = vmul.f32 %v5290_v40, %v5121_v37 }
 0x1e3   : > { %v5259_v44 = vpop.permute.xlu0 %3015  ;;  %v5261_v43 = vpop.permute.xlu1 %2476  ;;  %v1543_v32 = vmul.f32 %v5274_v62, %v5109_v30 }
 0x1e4   : > { %6647 = vst [vmem:[#allocation35_spill] sm:$0xff] %v5259_v44  ;;  %6648 = vst [vmem:[#allocation36_spill] sm:$0xff] %v5261_v43 }
 0x1e5   : > { %1917 = vrot.lane.b32.xlu1 %v5109_v30, %s4380_s19  ;;  %6655 = vst [vmem:[#allocation42_spill] sm:$0xff] %v5304_v27 }
 0x1e6   : > { %3003 = vrot.lane.b32.xlu0 %v5109_v30, %s4382_s24 }
 0x1e7   : > { %v5267_v33 = vpop.permute.xlu0 %3019  ;;  %v5269_v24 = vpop.permute.xlu1 %2293 }
 0x1e8   : > { %6649 = vst [vmem:[#allocation37_spill] sm:$0xff] %v5267_v33  ;;  %v5285_v33 = vsel %vm1597_vm10, 1.0, %v6650_v57  ;;  %vm3230_vm10 = vcmask 252928  }
 0x1e9   : > { %1921 = vrot.lane.b32.xlu1 %v5121_v37, %s4380_s19  ;;  %v1624_v13 = vmul.f32 %v5285_v33, %v5109_v30 }
 0x1ea   : > { %2464 = vrot.lane.b32.xlu0 %v5121_v37, %s4379_s18 }
 0x1eb   : > { %v5278_v43 = vpop.permute.xlu0 %2836  ;;  %v5280_v26 = vpop.permute.xlu1 %2108 }
 0x1ec   : > { %6651 = vst [vmem:[#allocation38_spill] sm:$0xff] %v5278_v43 }
 0x1ed   : > { %2460 = vrot.lane.b32.xlu1 %v5109_v30, %s4379_s18  ;;  %v1430_v30 = vand.u32 31, %v1375_v41 }
 0x1ee   : > { %1736 = vrot.lane.b32.xlu0 %v1543_v32, %s4383_s25 }
 0x1ef   : > { %v5296_v43 = vpop.permute.xlu0 %2651  ;;  %v5298_v17 = vpop.permute.xlu1 %3194  ;;  %vm1519_vm13 = vcmp.ne.s32.totalorder %v1430_v30, 31  ;;  %vm1600_vm0 = vcmp.ne.s32.totalorder %v1430_v30, 0 }
 0x1f0   : > { %6653 = vst [vmem:[#allocation40_spill] sm:$0xff] %v5296_v43  ;;  %6654 = vst [vmem:[#allocation41_spill] sm:$0xff] %v5298_v17  ;;  %v5334_v43 = vmul.f32 %v5322_v50, %v5119_v36 }
 0x1f1   : > { %3184 = vrot.lane.b32.xlu1 %v1624_v13, %s4387_s29 }
 0x1f2   : > { %1740 = vrot.lane.b32.xlu0 %v5304_v27, %s4383_s25  ;;  %6659 = vst [vmem:[#allocation46_spill] sm:$0xff] %v5334_v43 }
 0x1f3   : > { %v5310_v35 = vpop.permute.xlu1 %2832  ;;  %v5312_v60 = vpop.permute.xlu0 %1748 }
 0x1f4   : > { %6656 = vst [vmem:[#allocation43_spill] sm:$0xff] %v5310_v35 }
 0x1f5   : > { %2822 = vrot.lane.b32.xlu1 %v1543_v32, %s4388_s30 }
 0x1f6   : > { %1919 = vrot.lane.b32.xlu0 %v5119_v36, %s4380_s19 }
 0x1f7   : > { %v5317_v9 = vpop.permute.xlu1 %2655  ;;  %v5319_v29 = vpop.permute.xlu0 %1752 }
 0x1f8   : > { %6657 = vst [vmem:[#allocation44_spill] sm:$0xff] %v5317_v9  ;;  %6658 = vst [vmem:[#allocation45_spill] sm:$0xff] %v5319_v29  ;;  %v5337_v29 = vsel %vm1519_vm13, 1.0, %v6650_v57  ;;  %v5342_v9 = vsel %vm1599_vm14, 1.0, %v6650_v57 }
 0x1f9   : > { %2462 = vrot.lane.b32.xlu1 %v5119_v36, %s4379_s18  ;;  %6660 = vst [vmem:[#allocation47_spill] sm:$0xff] %v5342_v9  ;;  %v5351_v44 = vmul.f32 %v5337_v29, %v5132_v4  ;;  %v5355_v2 = vmul.f32 %v5342_v9, %v5121_v37  ;;  %v5373_v37 = vsel %vm1600_vm0, 1.0, %v6650_v57  ;;  %v5378_v9 = vld [vmem:[%s6504_s2 + $0x8] sm:$0xff] }
 0x1fa   : > { %1923 = vrot.lane.b32.xlu0 %v5132_v4, %s4380_s19  ;;  %6667 = vst [vmem:[#allocation54_spill] sm:$0xff] %v5373_v37  ;;  %6668 = vst [vmem:[#allocation55_spill] sm:$0xff] %v5378_v9  ;;  %4095 = vmatprep.mubr.msk.f32.mxu1 %vm3535_vm1, %v5378_v9 }
 0x1fb   : > { %v5328_v27 = vpop.permute.xlu0 %2488  ;;  %v5330_v41 = vpop.permute.xlu1 %1945  ;;  %6661 = vst [vmem:[#allocation48_spill] sm:$0xff] %v5351_v44  ;;  %6662 = vst [vmem:[#allocation49_spill] sm:$0xff] %v5355_v2  ;;  %4097 = vmatprep.mubr.msk.f32.mxu0 %vm3535_vm1, %v5378_v9 }
 0x1fd   : > { %1738 = vrot.lane.b32.xlu1 %v5334_v43, %s4383_s25  ;;  %v5358_v43 = vsel %vm1598_vm15, 1.0, %v6650_v57 }
 0x1fe   : > { %2098 = vrot.lane.b32.xlu0 %v1624_v13, %s4385_s27  ;;  %6663 = vst [vmem:[#allocation50_spill] sm:$0xff] %v5358_v43  ;;  %v5370_v1 = vmul.f32 %v5358_v43, %v5119_v36  ;;  %v5393_v36 = vmul.f32 %v5373_v37, %v5132_v4 }
 0x1ff   : > { %v5345_v47 = vpop.permute.xlu0 %2291  ;;  %v5347_v35 = vpop.permute.xlu1 %1949 }
 0x200   : > { %6666 = vst [vmem:[#allocation53_spill] sm:$0xff] %v5370_v1  ;;  %6670 = vst [vmem:[#allocation57_spill] sm:$0xff] %v5393_v36 }
 0x201   : > { %1742 = vrot.lane.b32.xlu1 %v5351_v44, %s4383_s25 }
 0x202   : > { %2102 = vrot.lane.b32.xlu0 %v5355_v2, %s4385_s27 }
 0x203   : > { %v5364_v8 = vpop.permute.xlu0 %2295  ;;  %v5366_v45 = vpop.permute.xlu1 %2492 }
 0x204   : > { %6664 = vst [vmem:[#allocation51_spill] sm:$0xff] %v5364_v8  ;;  %6665 = vst [vmem:[#allocation52_spill] sm:$0xff] %v5366_v45 }
 0x205   : > { %2100 = vrot.lane.b32.xlu1 %v5370_v1, %s4385_s27 }
 0x206   : > { %2641 = vrot.lane.b32.xlu0 %v1624_v13, %s4384_s26 }
 0x207   : > { %v5387_v30 = vpop.permute.xlu0 %3035  ;;  %v5389_v8 = vpop.permute.xlu1 %2110 }
 0x208   : > { %6669 = vst [vmem:[#allocation56_spill] sm:$0xff] %v5387_v30  ;;  %v1633_v30 = vmul.f32 %v5285_v33, %v5130_v39 }
 0x209   : > { %2104 = vrot.lane.b32.xlu1 %v5393_v36, %s4385_s27 }
 0x20a   : > { %2279 = vrot.lane.b32.xlu0 %v1543_v32, %s4386_s28 }
 0x20b   : > { %v5398_v43 = vpop.permute.xlu0 %2653  ;;  %v5400_v44 = vpop.permute.xlu1 %2114 }
 0x20c   : > { %6671 = vst [vmem:[#allocation58_spill] sm:$0xff] %v5398_v43  ;;  %6672 = vst [vmem:[#allocation59_spill] sm:$0xff] %v5400_v44 }
 0x20d   : > { %3021 = vrot.lane.b32.xlu1 %v5130_v39, %s4382_s24 }
 0x20e   : > { %2645 = vrot.lane.b32.xlu0 %v5355_v2, %s4384_s26  ;;  %v1552_v2 = vmul.f32 %v5274_v62, %v5130_v39 }
 0x20f   : > { %v5406_v13 = vpop.permute.xlu0 %2657  ;;  %v5408_v9 = vpop.permute.xlu1 %3196 }
 0x210   : > { %6673 = vst [vmem:[#allocation60_spill] sm:$0xff] %v5406_v13 }
 0x211   : > { %2643 = vrot.lane.b32.xlu1 %v5370_v1, %s4384_s26 }
 0x212   : > { %1935 = vrot.lane.b32.xlu0 %v5130_v39, %s4380_s19 }
 0x213   : > { %v5414_v32 = vpop.permute.xlu1 %3200  ;;  %v5416_v37 = vpop.permute.xlu0 %1764 }
 0x214   : > { %6674 = vst [vmem:[#allocation61_spill] sm:$0xff] %v5414_v32 }
 0x215   : > { %2647 = vrot.lane.b32.xlu1 %v5393_v36, %s4384_s26  ;;  %v5437_v36 = vmul.f32 %v5290_v40, %v5143_v46 }
 0x216   : > { %1939 = vrot.lane.b32.xlu0 %v5143_v46, %s4380_s19 }
 0x217   : > { %v5422_v44 = vpop.permute.xlu1 %3031  ;;  %v5424_v13 = vpop.permute.xlu0 %1768 }
 0x218   : > { %6675 = vst [vmem:[#allocation62_spill] sm:$0xff] %v5422_v44 }
 0x219   : > { %1754 = vrot.lane.b32.xlu1 %v1552_v2, %s4383_s25 }
 0x21a   : > { %2478 = vrot.lane.b32.xlu0 %v5130_v39, %s4379_s18  ;;  %v2516_v39 = vsel %vm2506_vm2, %v5254_v58, %v5192_v54 }
 0x21b   : > { %v5431_v32 = vpop.permute.xlu1 %2834  ;;  %v5433_v1 = vpop.permute.xlu0 %1947 }
 0x21c   : > { %6676 = vst [vmem:[#allocation63_spill] sm:$0xff] %v5431_v32 }
 0x21d   : > { %1758 = vrot.lane.b32.xlu1 %v5437_v36, %s4383_s25 }
 0x21e   : > { %2482 = vrot.lane.b32.xlu0 %v5143_v46, %s4379_s18 }
 0x21f   : > { %v5443_v43 = vpop.permute.xlu1 %2838  ;;  %v5445_v44 = vpop.permute.xlu0 %1951 }
 0x220   : > { %6677 = vst [vmem:[#allocation64_spill] sm:$0xff] %v5443_v43  ;;  %6678 = vst [vmem:[#allocation65_spill] sm:$0xff] %v5445_v44 }
 0x221   : > { %1937 = vrot.lane.b32.xlu1 %v5141_v5, %s4380_s19 }
 0x222   : > { %2116 = vrot.lane.b32.xlu0 %v1633_v30, %s4385_s27 }
 0x223   : > { %v2308_v32 = vpop.permute.xlu1 %2307  ;;  %v2491_v25 = vpop.permute.xlu0 %2490 }
 0x224   : > { %v2524_v17 = vsel %vm2506_vm2, %v2491_v25, %v5366_v45  ;;  %v2523_v46 = vsel %vm2506_vm2, %v5328_v27, %v2491_v25  ;;  %v2515_v25 = vsel %vm2506_vm2, %v5190_v18, %v5254_v58  ;;  %v2507_v27 = vsel %vm2506_vm2, %v5044_v6, %v5105_v28 }
 0x225   : > { %3544 = vmatprep.subr.mxu1 %v2524_v17  ;;  %1941 = vrot.lane.b32.xlu1 %v5154_v52, %s4380_s19  ;;  %v2508_v17 = vsel %vm2506_vm2, %v5105_v28, %v5060_v11  ;;  %v5483_v18 = vmul.f32 %v5322_v50, %v5141_v5  ;;  %v5492_v6 = vmul.f32 %v5337_v29, %v5154_v52 }
 0x226   : > { %3202 = vrot.lane.b32.xlu0 %v1633_v30, %s4387_s29  ;;  %3545 = vmatpush1.msra.mxu1 %v2523_v46  ;;  %v1561_v11 = vmul.f32 %v5274_v62, %v5148_v48  ;;  %v1642_v62 = vmul.f32 %v5285_v33, %v5148_v48 }
 0x227   : > { %v5462_v43 = vpop.permute.xlu1 %2130  ;;  %3546 = vmatprep.subr.mxu1 %v2516_v39  ;;  %v5464_v44 = vpop.permute.xlu0 %2494 }
 0x228   : > { %6679 = vst [vmem:[#allocation66_spill] sm:$0xff] %v5464_v44  ;;  %3547 = vmatpush1.msra.mxu1 %v2515_v25  ;;  %v5527_v44 = vmul.f32 %v5290_v40, %v5161_v55 }
 0x229   : > { %3548 = vmatprep.subr.mxu1 %v2508_v17  ;;  %2297 = vrot.lane.b32.xlu1 %v1552_v2, %s4386_s28 }
 0x22a   : > { %2840 = vrot.lane.b32.xlu0 %v1552_v2, %s4388_s30  ;;  %3549 = vmatpush1.msra.mxu1 %v2507_v27 }
 0x22b   : > { %v5477_v46 = vpop.permute.xlu1 %3216 }
 0x22c   : > { %v5479_v39 = vpop.permute.xlu0 %2311 }
 0x22d   : > { %2659 = vrot.lane.b32.xlu1 %v1633_v30, %s4384_s26 }
 0x22e   : > { %1756 = vrot.lane.b32.xlu0 %v5483_v18, %s4383_s25 }
 0x22f   : > { %v5488_v58 = vpop.permute.xlu1 %3033 }
 0x230   : > { %v2127_v25 = vpop.permute.xlu0 %2126 }
 0x231   : > { %2480 = vrot.lane.b32.xlu1 %v5141_v5, %s4379_s18 }
 0x232   : > { %1760 = vrot.lane.b32.xlu0 %v5492_v6, %s4383_s25 }
 0x233   : > { %v5498_v28 = vpop.permute.xlu1 %3037 }
 0x234   : > { %6680 = vst [vmem:[#allocation67_spill] sm:$0xff] %v5498_v28  ;;  %v5500_v2 = vpop.permute.xlu0 %3212 }
 0x235   : > { %2484 = vrot.lane.b32.xlu1 %v5154_v52, %s4379_s18 }
 0x236   : > { %3039 = vrot.lane.b32.xlu0 %v5148_v48, %s4382_s24 }
 0x237   : > { %v5506_v30 = vpop.permute.xlu1 %2854 }
 0x238   : > { %6681 = vst [vmem:[#allocation68_spill] sm:$0xff] %v5506_v30  ;;  %v5508_v17 = vpop.permute.xlu0 %2850 }
 0x239   : > { %1953 = vrot.lane.b32.xlu1 %v5148_v48, %s4380_s19 }
 0x23a   : > { %2500 = vrot.lane.b32.xlu0 %v5161_v55, %s4379_s18 }
 0x23b   : > { %v5514_v27 = vpop.permute.xlu1 %2669 }
 0x23c   : > { %6682 = vst [vmem:[#allocation69_spill] sm:$0xff] %v5514_v27  ;;  %v5516_v28 = vpop.permute.xlu0 %2673 }
 0x23d   : > { %6683 = vst [vmem:[#allocation70_spill] sm:$0xff] %v5516_v28  ;;  %1957 = vrot.lane.b32.xlu1 %v5161_v55, %s4380_s19 }
 0x23e   : > { %1772 = vrot.lane.b32.xlu0 %v1561_v11, %s4383_s25 }
 0x23f   : > { %v5523_v54 = vpop.permute.xlu1 %1766 }
 0x240   : > { %v2129_v45 = vpop.permute.xlu0 %2128 }
 0x241   : > { %2496 = vrot.lane.b32.xlu1 %v5148_v48, %s4379_s18  ;;  %v2335_v48 = vsel %vm2325_vm3, %v5345_v47, %v5269_v24 }
 0x242   : > { %1776 = vrot.lane.b32.xlu0 %v5527_v44, %s4383_s25 }
 0x243   : > { %v5533_v52 = vpop.permute.xlu1 %1770 }
 0x244   : > { %6684 = vst [vmem:[#allocation71_spill] sm:$0xff] %v5533_v52  ;;  %v5537_v5 = vpop.permute.xlu0 %2132  ;;  %v2334_v52 = vsel %vm2325_vm3, %v5235_v31, %v5345_v47  ;;  %v2162_v31 = vsel %vm2144_vm4, %v2129_v45, %v5462_v43  ;;  %v2161_v47 = vsel %vm2144_vm4, %v2127_v25, %v2129_v45  ;;  %v1376_v45 = vadd.s32 1024, %v4877_v19 }
 0x245   : > { %6685 = vst [vmem:[#allocation72_spill] sm:$0xff] %v5537_v5  ;;  %2134 = vrot.lane.b32.xlu1 %v1642_v62, %s4385_s27  ;;  %v2145_v25 = vsel %vm2144_vm4, %v5082_v20, %v5152_v14  ;;  %v1980_v19 = vsel %vm1963_vm5, %v5330_v41, %v5433_v1  ;;  %v1973_v20 = vsel %vm1963_vm5, %v5237_v56, %v5183_v51 }
 0x246   : > { %1955 = vrot.lane.b32.xlu0 %v5156_v53, %s4380_s19  ;;  %v1965_v41 = vsel %vm1963_vm5, %v5070_v15, %v5054_v10 }
 0x247   : > { %v2310_v40 = vpop.permute.xlu1 %2309 }
 0x248   : > { %v5542_v55 = vpop.permute.xlu0 %3214  ;;  %v2343_v27 = vsel %vm2325_vm3, %v2310_v40, %v5479_v39  ;;  %v2342_v28 = vsel %vm2325_vm3, %v2308_v32, %v2310_v40  ;;  %v2327_v32 = vsel %vm2325_vm3, %v5197_v63, %v5128_v38  ;;  %v2154_v40 = vsel %vm2144_vm4, %v5389_v8, %v5243_v61 }
 0x249   : > { %3550 = vmatprep.subr.mxu1 %v2343_v27  ;;  %3220 = vrot.lane.b32.xlu1 %v1642_v62, %s4387_s29 }
 0x24a   : > { %1959 = vrot.lane.b32.xlu0 %v5169_v0, %s4380_s19  ;;  %3551 = vmatpush1.msra.mxu1 %v2342_v28  ;;  %v2326_v28 = vsel %vm2325_vm3, %v5089_v22, %v5197_v63  ;;  %v2146_v22 = vsel %vm2144_vm4, %v5152_v14, %v5091_v23  ;;  %v1437_v14 = vand.u32 31, %v1376_v45 }
 0x24b   : > { %3552 = vmatprep.subr.mxu1 %v2335_v48  ;;  %v5553_v33 = vpop.permute.xlu1 %2313 }
 0x24c   : > { %v5558_v5 = vpop.permute.xlu0 %3218  ;;  %3553 = vmatpush1.msra.mxu1 %v2334_v52  ;;  %vm1520_vm7 = vcmp.ne.s32.totalorder %v1437_v14, 31  ;;  %vm1601_vm9 = vcmp.ne.s32.totalorder %v1437_v14, 0  ;;  %v6696_v14 = vld [vmem:[#allocation17_spill] sm:$0xff] }
 0x24d   : > { %3554 = vmatprep.subr.mxu1 %v2327_v32  ;;  %2858 = vrot.lane.b32.xlu1 %v1561_v11, %s4388_s30  ;;  %v5615_v32 = vmul.f32 %v5322_v50, %v5156_v53  ;;  %v1799_v50 = vsel %vm1782_vm6, %v5416_v37, %v5523_v54  ;;  %v5652_v37 = vsel %vm1520_vm7, 1.0, %v6650_v57 }
 0x24e   : > { %2315 = vrot.lane.b32.xlu0 %v1561_v11, %s4386_s28  ;;  %3555 = vmatpush1.msra.mxu1 %v2326_v28  ;;  %v2153_v11 = vsel %vm2144_vm4, %v5280_v26, %v5389_v8  ;;  %v1981_v26 = vsel %vm1963_vm5, %v5433_v1, %v5347_v35  ;;  %v1964_v28 = vsel %vm1963_vm5, %v5046_v7, %v5070_v15 }
 0x24f   : > { %3556 = vmatprep.subr.mxu1 %v2162_v31  ;;  %v5570_v52 = vpop.permute.xlu1 %2671  ;;  %v5639_v7 = vmul.f32 %v5337_v29, %v5169_v0  ;;  %v1792_v31 = vsel %vm1782_vm6, %v5312_v60, %v5231_v42 }
 0x250   : > { %v5573_v27 = vpop.permute.xlu0 %2852  ;;  %3557 = vmatpush1.msra.mxu1 %v2161_v47  ;;  %v1791_v47 = vsel %vm1782_vm6, %v5221_v21, %v5312_v60  ;;  %v3248_v60 = vsel %vm3230_vm10, %v5542_v55, %v5477_v46 }
 0x251   : > { %3558 = vmatprep.subr.mxu1 %v2154_v40  ;;  %2498 = vrot.lane.b32.xlu1 %v5156_v53, %s4379_s18  ;;  %v1783_v40 = vsel %vm1782_vm6, %v5062_v12, %v5165_v59  ;;  %v3247_v12 = vsel %vm3230_vm10, %v5500_v2, %v5542_v55  ;;  %v6694_v55 = vld [vmem:[#allocation8_spill] sm:$0xff] }
 0x252   : > { %2677 = vrot.lane.b32.xlu0 %v1642_v62, %s4384_s26  ;;  %3559 = vmatpush1.msra.mxu1 %v2153_v11  ;;  %v1972_v62 = vsel %vm1963_vm5, %v5174_v3, %v5237_v56  ;;  %v1800_v3 = vsel %vm1782_vm6, %v5523_v54, %v5424_v13  ;;  %v1784_v54 = vsel %vm1782_vm6, %v5165_v59, %v5075_v16  ;;  %v5679_v59 = vsel %vm1601_vm9, 1.0, %v6650_v57  ;;  %v6695_v57 = vld [vmem:[#allocation26_spill] sm:$0xff] }
 0x253   : > { %3560 = vmatprep.subr.mxu1 %v2146_v22  ;;  %v5588_v63 = vpop.permute.xlu1 %2675  ;;  %v5671_v11 = vmul.f32 %v5239_v49, %v5652_v37  ;;  %v3240_v22 = vsel %vm3230_vm10, %v5408_v9, %v5252_v34  ;;  %v3232_v2 = vsel %vm3230_vm10, %v6695_v57, %v6694_v55 }
 0x254   : > { %6686 = vst [vmem:[#allocation73_spill] sm:$0xff] %v5588_v63  ;;  %v5593_v48 = vpop.permute.xlu0 %2856  ;;  %3561 = vmatpush1.msra.mxu1 %v2145_v25  ;;  %v6692_v25 = vld [vmem:[#allocation41_spill] sm:$0xff] }
 0x255   : > { %6687 = vst [vmem:[#allocation74_spill] sm:$0xff] %v5593_v48  ;;  %3562 = vmatprep.subr.mxu1 %v1981_v26  ;;  %2502 = vrot.lane.b32.xlu1 %v5169_v0, %s4379_s18  ;;  %6690 = vst [vmem:[#allocation77_spill] sm:$0xff] %v5671_v11  ;;  %v3239_v26 = vsel %vm3230_vm10, %v6692_v25, %v5408_v9  ;;  %v6697_v9 = vld [vmem:[#allocation56_spill] sm:$0xff] }
 0x256   : > { %2319 = vrot.lane.b32.xlu0 %v5527_v44, %s4386_s28  ;;  %3563 = vmatpush1.msra.mxu1 %v1980_v19 }
 0x257   : > { %3564 = vmatprep.subr.mxu1 %v1973_v20  ;;  %v5608_v8 = vpop.permute.xlu1 %1917  ;;  %v5698_v20 = vmul.f32 %v5239_v49, %v5679_v59 }
 0x258   : > { %v5617_v1 = vpop.permute.xlu0 %3003  ;;  %3565 = vmatpush1.msra.mxu1 %v1972_v62  ;;  %v3231_v62 = vsel %vm3230_vm10, %v6696_v14, %v6695_v57  ;;  %v6706_v57 = vld [vmem:[#allocation6_spill] sm:$0xff] }
 0x259   : > { %6688 = vst [vmem:[#allocation75_spill] sm:$0xff] %v5617_v1  ;;  %3566 = vmatprep.subr.mxu1 %v1965_v41  ;;  %1774 = vrot.lane.b32.xlu1 %v5615_v32, %s4383_s25  ;;  %v3067_v41 = vsel %vm3049_vm11, %v5488_v58, %v6697_v9 }
 0x25a   : > { %2301 = vrot.lane.b32.xlu0 %v5437_v36, %s4386_s28  ;;  %3567 = vmatpush1.msra.mxu1 %v1964_v28 }
 0x25b   : > { %3568 = vmatprep.subr.mxu1 %v1800_v3  ;;  %v5632_v56 = vpop.permute.xlu1 %1921  ;;  %v6699_v3 = vld [vmem:[#allocation62_spill] sm:$0xff] }
 0x25c   : > { %6689 = vst [vmem:[#allocation76_spill] sm:$0xff] %v5632_v56  ;;  %v5641_v15 = vpop.permute.xlu0 %2464  ;;  %3569 = vmatpush1.msra.mxu1 %v1799_v50  ;;  %v3066_v50 = vsel %vm3049_vm11, %v6699_v3, %v5488_v58  ;;  %v6704_v58 = vld [vmem:[#allocation4_spill] sm:$0xff]  ;;  %v6708_v3 = vld [vmem:[#allocation34_spill] sm:$0xff] }
 0x25d   : > { %3570 = vmatprep.subr.mxu1 %v1792_v31  ;;  %1778 = vrot.lane.b32.xlu1 %v5639_v7, %s4383_s25 }
 0x25e   : > { %2468 = vrot.lane.b32.xlu0 %v5239_v49, %s4379_s18  ;;  %3571 = vmatpush1.msra.mxu1 %v1791_v47  ;;  %v6701_v47 = vld [vmem:[#allocation29_spill] sm:$0xff] }
 0x25f   : > { %3572 = vmatprep.subr.mxu1 %v1784_v54  ;;  %v5659_v29 = vpop.permute.xlu1 %2460  ;;  %v6702_v54 = vld [vmem:[#allocation35_spill] sm:$0xff] }
 0x260   : > { %v5664_v21 = vpop.permute.xlu0 %1736  ;;  %3573 = vmatpush1.msra.mxu1 %v1783_v40  ;;  %v3059_v40 = vsel %vm3049_vm11, %v6702_v54, %v6701_v47  ;;  %v6750_v47 = vld [vmem:[#allocation19_spill] sm:$0xff] }
 0x261   : > { %3584 = vmatprep.subr.mxu1 %v3248_v60  ;;  %2466 = vrot.lane.b32.xlu1 %v5132_v4, %s4379_s18  ;;  %v6703_v60 = vld [vmem:[#allocation30_spill] sm:$0xff] }
 0x262   : > { %1744 = vrot.lane.b32.xlu0 %v5671_v11, %s4383_s25  ;;  %3585 = vmatpush2.msra.mxu1 %v3247_v12  ;;  %v3058_v12 = vsel %vm3049_vm11, %v6703_v60, %v6702_v54  ;;  %v6710_v54 = vld [vmem:[#allocation63_spill] sm:$0xff] }
 0x263   : > { %3586 = vmatprep.subr.mxu1 %v3240_v22  ;;  %v5686_v45 = vpop.permute.xlu1 %3184  ;;  %v6705_v22 = vld [vmem:[#allocation10_spill] sm:$0xff] }
 0x264   : > { %6691 = vst [vmem:[#allocation78_spill] sm:$0xff] %v5686_v45  ;;  %v5691_v19 = vpop.permute.xlu0 %1740  ;;  %3587 = vmatpush2.msra.mxu1 %v3239_v26  ;;  %v3051_v25 = vsel %vm3049_vm11, %v6705_v22, %v6704_v58  ;;  %v6767_v45 = vld [vmem:[#allocation12_spill] sm:$0xff] }
 0x265   : > { %6693 = vst [vmem:[#allocation41_spill] sm:$0xff] %v5691_v19  ;;  %3588 = vmatprep.subr.mxu1 %v3232_v2  ;;  %2317 = vrot.lane.b32.xlu1 %v5615_v32, %s4386_s28  ;;  %v3050_v2 = vsel %vm3049_vm11, %v6706_v57, %v6705_v22  ;;  %v6713_v57 = vld [vmem:[#allocation15_spill] sm:$0xff] }
 0x266   : > { %2106 = vrot.lane.b32.xlu0 %v5698_v20, %s4385_s27  ;;  %3589 = vmatpush2.msra.mxu1 %v3231_v62  ;;  %v2886_v62 = vsel %vm2868_vm12, %v5573_v27, %v5506_v30 }
 0x267   : > { %3590 = vmatprep.subr.mxu1 %v3067_v41  ;;  %v5710_v28 = vpop.permute.xlu1 %2822  ;;  %v2885_v41 = vsel %vm2868_vm12, %v5508_v17, %v5573_v27  ;;  %v6714_v17 = vld [vmem:[#allocation31_spill] sm:$0xff] }
 0x268   : > { %6698 = vst [vmem:[#allocation26_spill] sm:$0xff] %v5710_v28  ;;  %v5715_v31 = vpop.permute.xlu0 %1919  ;;  %3591 = vmatpush2.msra.mxu1 %v3066_v50  ;;  %v6709_v50 = vld [vmem:[#allocation38_spill] sm:$0xff]  ;;  %v2870_v27 = vsel %vm2868_vm12, %v6714_v17, %v6713_v57 }
 0x269   : > { %6700 = vst [vmem:[#allocation17_spill] sm:$0xff] %v5715_v31  ;;  %3592 = vmatprep.subr.mxu1 %v3059_v40  ;;  %2321 = vrot.lane.b32.xlu1 %v5639_v7, %s4386_s28  ;;  %v2878_v40 = vsel %vm2868_vm12, %v6710_v54, %v6709_v50  ;;  %v6744_v50 = vld [vmem:[#allocation18_spill] sm:$0xff] }
 0x26a   : > { %2649 = vrot.lane.b32.xlu0 %v5698_v20, %s4384_s26  ;;  %3593 = vmatpush2.msra.mxu1 %v3058_v12  ;;  %v6712_v12 = vld [vmem:[#allocation43_spill] sm:$0xff] }
 0x26b   : > { %3594 = vmatprep.subr.mxu1 %v3051_v25  ;;  %v5730_v26 = vpop.permute.xlu1 %2462  ;;  %v2877_v22 = vsel %vm2868_vm12, %v6712_v12, %v6710_v54  ;;  %v6718_v12 = vld [vmem:[#allocation69_spill] sm:$0xff] }
 0x26c   : > { %v5735_v14 = vpop.permute.xlu0 %1923  ;;  %3595 = vmatpush2.msra.mxu1 %v3050_v2  ;;  %v6715_v2 = vld [vmem:[#allocation20_spill] sm:$0xff] }
 0x26d   : > { %6707 = vst [vmem:[#allocation62_spill] sm:$0xff] %v5735_v14  ;;  %3596 = vmatprep.subr.mxu1 %v2886_v62  ;;  %2299 = vrot.lane.b32.xlu1 %v5483_v18, %s4386_s28  ;;  %v2869_v62 = vsel %vm2868_vm12, %v6715_v2, %v6714_v17  ;;  %v6721_v17 = vld [vmem:[#allocation58_spill] sm:$0xff]  ;;  %v6726_v14 = vld [vmem:[#allocation24_spill] sm:$0xff] }
 0x26e   : > { %1943 = vrot.lane.b32.xlu0 %v6708_v3, %s4380_s19  ;;  %3597 = vmatpush2.msra.mxu1 %v2885_v41  ;;  %v6716_v41 = vld [vmem:[#allocation70_spill] sm:$0xff] }
 0x26f   : > { %3598 = vmatprep.subr.mxu1 %v2878_v40  ;;  %v5750_v60 = vpop.permute.xlu1 %1738  ;;  %v2705_v54 = vsel %vm2687_vm8, %v5570_v52, %v6716_v41  ;;  %v6735_v41 = vld [vmem:[#allocation50_spill] sm:$0xff] }
 0x270   : > { %6711 = vst [vmem:[#allocation35_spill] sm:$0xff] %v5750_v60  ;;  %v5755_v25 = vpop.permute.xlu0 %2098  ;;  %3599 = vmatpush2.msra.mxu1 %v2877_v22  ;;  %v2704_v22 = vsel %vm2687_vm8, %v6718_v12, %v5570_v52  ;;  %v6720_v60 = vld [vmem:[#allocation44_spill] sm:$0xff]  ;;  %v6724_v12 = vld [vmem:[#allocation39_spill] sm:$0xff]  ;;  %v5841_v63 = vmul.f32 %v6735_v41, %v5156_v53  ;;  %v5869_v30 = vmul.f32 %v6735_v41, %v6744_v50 }
 0x271   : > { %3600 = vmatprep.subr.mxu1 %v2870_v27  ;;  %2303 = vrot.lane.b32.xlu1 %v5492_v6, %s4386_s28  ;;  %v2697_v2 = vsel %vm2687_vm8, %v6721_v17, %v6720_v60  ;;  %v5801_v19 = vmul.f32 %v6724_v12, %v5652_v37  ;;  %v5875_v58 = vmul.f32 %v6724_v12, %v5679_v59 }
 0x272   : > { %2486 = vrot.lane.b32.xlu0 %v6708_v3, %s4379_s18  ;;  %3601 = vmatpush2.msra.mxu1 %v2869_v62  ;;  %v5783_v62 = vld [vmem:[%s6504_s2] sm:$0xff]  ;;  %6736 = vst [vmem:[#allocation69_spill] sm:$0xff] %v5841_v63 }
 0x273   : > { %3602 = vmatprep.subr.mxu1 %v2705_v54  ;;  %v5770_v40 = vpop.permute.xlu1 %1742  ;;  %6722 = vst [vmem:[#allocation6_spill] sm:$0xff] %v5783_v62  ;;  %v6723_v54 = vld [vmem:[#allocation40_spill] sm:$0xff] }
 0x274   : > { %6717 = vst [vmem:[#allocation30_spill] sm:$0xff] %v5770_v40  ;;  %v5775_v27 = vpop.permute.xlu0 %2102  ;;  %3603 = vmatpush2.msra.mxu1 %v2704_v22  ;;  %v2696_v52 = vsel %vm2687_vm8, %v6723_v54, %v6721_v17  ;;  %v5796_v40 = vmul.f32 %v6708_v3, %v5652_v37  ;;  %v6727_v54 = vld [vmem:[#allocation9_spill] sm:$0xff] }
 0x275   : > { %6719 = vst [vmem:[#allocation10_spill] sm:$0xff] %v5775_v27  ;;  %3604 = vmatprep.subr.mxu1 %v2697_v2  ;;  %1925 = vrot.lane.b32.xlu1 %v5239_v49, %s4380_s19  ;;  %v6732_v27 = vld [vmem:[#allocation48_spill] sm:$0xff]  ;;  %6745 = vst [vmem:[#allocation9_spill] sm:$0xff] %v5869_v30 }
 0x276   : > { %2504 = vrot.lane.b32.xlu0 %v6724_v12, %s4379_s18  ;;  %3605 = vmatpush2.msra.mxu1 %v2696_v52  ;;  %v2690_v52 = vsel %vm2687_vm8, %v6727_v54, %v6726_v14 }
 0x277   : > { %v5792_v22 = vpop.permute.xlu1 %2100  ;;  %3607 = vmatmul.mubr.f32.vlgmr.msra.gmra.mxu1 %v5783_v62  ;;  %v6733_v62 = vld [vmem:[#allocation42_spill] sm:$0xff] }
 0x278   : > { %6725 = vst [vmem:[#allocation34_spill] sm:$0xff] %v5792_v22  ;;  %v2642_v2 = vpop.permute.xlu0 %2641  ;;  %v6731_v22 = vld [vmem:[#allocation46_spill] sm:$0xff] }
 0x279   : > { %v2691_v17 = vsel %vm2687_vm8, %v6726_v14, %v2642_v2  ;;  %1762 = vrot.lane.b32.xlu1 %v5796_v40, %s4383_s25  ;;  %6746 = vst [vmem:[#allocation46_spill] sm:$0xff] %v5875_v58 }
 0x27a   : > { %3619 = vmatprep.subr.mxu0 %v2691_v17  ;;  %1780 = vrot.lane.b32.xlu0 %v5801_v19, %s4383_s25 }
 0x27b   : > { %3620 = vmatpush1.msra.mxu0 %v2690_v52  ;;  %v5812_v31 = vpop.permute.xlu1 %2104 }
 0x27c   : > { %6728 = vst [vmem:[#allocation63_spill] sm:$0xff] %v5812_v31  ;;  %v5814_v56 = vpop.permute.xlu0 %2279 }
 0x27d   : > { %1961 = vrot.lane.b32.xlu1 %v6724_v12, %s4380_s19 }
 0x27e   : > { %2323 = vrot.lane.b32.xlu0 %v5801_v19, %s4386_s28 }
 0x27f   : > { %v5820_v37 = vpop.permute.xlu1 %3021 }
 0x280   : > { %6729 = vst [vmem:[#allocation43_spill] sm:$0xff] %v5820_v37  ;;  %v5822_v17 = vpop.permute.xlu0 %2645 }
 0x281   : > { %6730 = vst [vmem:[#allocation31_spill] sm:$0xff] %v5822_v17  ;;  %2281 = vrot.lane.b32.xlu1 %v6731_v22, %s4386_s28 }
 0x282   : > { %2305 = vrot.lane.b32.xlu0 %v5796_v40, %s4386_s28 }
 0x283   : > { %v2644_v14 = vpop.permute.xlu1 %2643 }
 0x284   : > { %v5828_v54 = vpop.permute.xlu0 %1935  ;;  %v2693_v52 = vsel %vm2687_vm8, %v2644_v14, %v5822_v17  ;;  %v2692_v31 = vsel %vm2687_vm8, %v2642_v2, %v2644_v14  ;;  %v6738_v14 = vld [vmem:[#allocation54_spill] sm:$0xff] }
 0x285   : > { %3696 = vmatprep.subr.mxu1 %v2693_v52  ;;  %2285 = vrot.lane.b32.xlu1 %v6732_v27, %s4386_s28  ;;  %v5853_v52 = vmul.f32 %v6738_v14, %v5169_v0  ;;  %v6740_v17 = vld [vmem:[#allocation22_spill] sm:$0xff] }
 0x286   : > { %2283 = vrot.lane.b32.xlu0 %v6733_v62, %s4386_s28  ;;  %3697 = vmatpush1.msra.mxu1 %v2692_v31 }
 0x287   : > { %v5837_v60 = vpop.permute.xlu1 %2647  ;;  %6739 = vst [vmem:[#allocation40_spill] sm:$0xff] %v5853_v52 }
 0x288   : > { %6734 = vst [vmem:[#allocation20_spill] sm:$0xff] %v5837_v60  ;;  %v5843_v57 = vpop.permute.xlu0 %1939  ;;  %v6741_v60 = vld [vmem:[#allocation47_spill] sm:$0xff] }
 0x289   : > { %6737 = vst [vmem:[#allocation58_spill] sm:$0xff] %v5843_v57  ;;  %2136 = vrot.lane.b32.xlu1 %v5841_v63, %s4385_s27  ;;  %v5859_v28 = vmul.f32 %v6741_v60, %v6740_v17  ;;  %v5891_v37 = vmul.f32 %v6741_v60, %v6750_v47 }
 0x28a   : > { %2287 = vrot.lane.b32.xlu0 %v5671_v11, %s4386_s28  ;;  %v6748_v11 = vld [vmem:[#allocation21_spill] sm:$0xff] }
 0x28b   : > { %v5849_v2 = vpop.permute.xlu1 %1754  ;;  %6742 = vst [vmem:[#allocation39_spill] sm:$0xff] %v5859_v28  ;;  %6751 = vst [vmem:[#allocation22_spill] sm:$0xff] %v5891_v37 }
 0x28c   : > { %v5855_v31 = vpop.permute.xlu0 %2478 }
 0x28d   : > { %2140 = vrot.lane.b32.xlu1 %v5853_v52, %s4385_s27 }
 0x28e   : > { %2138 = vrot.lane.b32.xlu0 %v5859_v28, %s4385_s27 }
 0x28f   : > { %v5865_v57 = vpop.permute.xlu1 %1758 }
 0x290   : > { %6743 = vst [vmem:[#allocation24_spill] sm:$0xff] %v5865_v57  ;;  %v5871_v48 = vpop.permute.xlu0 %2482  ;;  %v5885_v57 = vmul.f32 %v6738_v14, %v6748_v11  ;;  %v5903_v14 = vmul.f32 %v6708_v3, %v5679_v59 }
 0x291   : > { %2118 = vrot.lane.b32.xlu1 %v5869_v30, %s4385_s27 }
 0x292   : > { %2142 = vrot.lane.b32.xlu0 %v5875_v58, %s4385_s27  ;;  %6749 = vst [vmem:[#allocation54_spill] sm:$0xff] %v5885_v57  ;;  %6753 = vst [vmem:[#allocation18_spill] sm:$0xff] %v5903_v14 }
 0x293   : > { %v5881_v1 = vpop.permute.xlu1 %1937 }
 0x294   : > { %6747 = vst [vmem:[#allocation50_spill] sm:$0xff] %v5881_v1  ;;  %v5887_v41 = vpop.permute.xlu0 %2116 }
 0x295   : > { %2122 = vrot.lane.b32.xlu1 %v5885_v57, %s4385_s27 }
 0x296   : > { %2120 = vrot.lane.b32.xlu0 %v5891_v37, %s4385_s27 }
 0x297   : > { %v5897_v9 = vpop.permute.xlu1 %1941 }
 0x298   : > { %6752 = vst [vmem:[#allocation47_spill] sm:$0xff] %v5897_v9  ;;  %v5899_v62 = vpop.permute.xlu0 %3202 }
 0x299   : > { %3222 = vrot.lane.b32.xlu1 %v5841_v63, %s4387_s29 }
 0x29a   : > { %2124 = vrot.lane.b32.xlu0 %v5903_v14, %s4385_s27 }
 0x29b   : > { %v5909_v60 = vpop.permute.xlu1 %2297 }
 0x29c   : > { %v5911_v1 = vpop.permute.xlu0 %2840 }
 0x29d   : > { %6754 = vst [vmem:[#allocation21_spill] sm:$0xff] %v5911_v1  ;;  %3226 = vrot.lane.b32.xlu1 %v5853_v52, %s4387_s29 }
 0x29e   : > { %3224 = vrot.lane.b32.xlu0 %v5859_v28, %s4387_s29  ;;  %v6763_v28 = vld [vmem:[#allocation66_spill] sm:$0xff] }
 0x29f   : > { %v5917_v9 = vpop.permute.xlu1 %2659 }
 0x2a0   : > { %6755 = vst [vmem:[#allocation19_spill] sm:$0xff] %v5917_v9  ;;  %v5919_v59 = vpop.permute.xlu0 %1756 }
 0x2a1   : > { %6756 = vst [vmem:[#allocation79_spill] sm:$0xff] %v5919_v59  ;;  %3204 = vrot.lane.b32.xlu1 %v5869_v30, %s4387_s29  ;;  %v6760_v59 = vld [vmem:[#allocation53_spill] sm:$0xff] }
 0x2a2   : > { %3228 = vrot.lane.b32.xlu0 %v5875_v58, %s4387_s29 }
 0x2a3   : > { %v5925_v63 = vpop.permute.xlu1 %2480 }
 0x2a4   : > { %v5927_v55 = vpop.permute.xlu0 %1760 }
 0x2a5   : > { %6757 = vst [vmem:[#allocation80_spill] sm:$0xff] %v5927_v55  ;;  %3208 = vrot.lane.b32.xlu1 %v5885_v57, %s4387_s29  ;;  %v6761_v55 = vld [vmem:[#allocation57_spill] sm:$0xff] }
 0x2a6   : > { %3206 = vrot.lane.b32.xlu0 %v5891_v37, %s4387_s29  ;;  %v6762_v57 = vld [vmem:[#allocation49_spill] sm:$0xff] }
 0x2a7   : > { %v5933_v1 = vpop.permute.xlu1 %2484 }
 0x2a8   : > { %6758 = vst [vmem:[#allocation81_spill] sm:$0xff] %v5933_v1  ;;  %v5935_v9 = vpop.permute.xlu0 %3039 }
 0x2a9   : > { %6759 = vst [vmem:[#allocation82_spill] sm:$0xff] %v5935_v9  ;;  %3186 = vrot.lane.b32.xlu1 %v6760_v59, %s4387_s29 }
 0x2aa   : > { %3210 = vrot.lane.b32.xlu0 %v5903_v14, %s4387_s29 }
 0x2ab   : > { %v5941_v58 = vpop.permute.xlu1 %1953 }
 0x2ac   : > { %v5943_v30 = vpop.permute.xlu0 %2500 }
 0x2ad   : > { %3190 = vrot.lane.b32.xlu1 %v6761_v55, %s4387_s29  ;;  %v6764_v55 = vld [vmem:[#allocation52_spill] sm:$0xff] }
 0x2ae   : > { %3188 = vrot.lane.b32.xlu0 %v6762_v57, %s4387_s29  ;;  %v2525_v57 = vsel %vm2506_vm2, %v6764_v55, %v6763_v28  ;;  %v6768_v55 = vld [vmem:[#allocation5_spill] sm:$0xff] }
 0x2af   : > { %v1958_v37 = vpop.permute.xlu1 %1957 }
 0x2b0   : > { %v5949_v1 = vpop.permute.xlu0 %1772 }
 0x2b1   : > { %3041 = vrot.lane.b32.xlu1 %v5156_v53, %s4382_s24  ;;  %v6765_v53 = vld [vmem:[#allocation36_spill] sm:$0xff] }
 0x2b2   : > { %3192 = vrot.lane.b32.xlu0 %v5698_v20, %s4387_s29  ;;  %v2518_v20 = vsel %vm2506_vm2, %v6765_v53, %v5855_v31 }
 0x2b3   : > { %v2497_v59 = vpop.permute.xlu1 %2496 }
 0x2b4   : > { %v5955_v14 = vpop.permute.xlu0 %1776  ;;  %v2526_v52 = vsel %vm2506_vm2, %v6763_v28, %v2497_v59  ;;  %v2510_v28 = vsel %vm2506_vm2, %v6767_v45, %v5659_v29 }
 0x2b5   : > { %3621 = vmatprep.subr.mxu0 %v2526_v52  ;;  %3045 = vrot.lane.b32.xlu1 %v5169_v0, %s4382_s24  ;;  %v6766_v52 = vld [vmem:[#allocation25_spill] sm:$0xff] }
 0x2b6   : > { %3043 = vrot.lane.b32.xlu0 %v6740_v17, %s4382_s24  ;;  %3622 = vmatpush1.msra.mxu0 %v2525_v57  ;;  %v2517_v27 = vsel %vm2506_vm2, %v6766_v52, %v6765_v53  ;;  %v2509_v57 = vsel %vm2506_vm2, %v6768_v55, %v6767_v45 }
 0x2b7   : > { %3623 = vmatprep.subr.mxu0 %v2518_v20  ;;  %v5969_v9 = vpop.permute.xlu1 %2134 }
 0x2b8   : > { %v1956_v0 = vpop.permute.xlu0 %1955  ;;  %3624 = vmatpush1.msra.mxu0 %v2517_v27 }
 0x2b9   : > { %v5979_v17 = vsel %vm1963_vm5, %v5941_v58, %v1956_v0  ;;  %3625 = vmatprep.subr.mxu0 %v2510_v28  ;;  %3023 = vrot.lane.b32.xlu1 %v6744_v50, %s4382_s24  ;;  %v5987_v53 = vsel %vm1963_vm5, %v1956_v0, %v1958_v37  ;;  %v6769_v0 = vld [vmem:[#allocation13_spill] sm:$0xff] }
 0x2ba   : > { %3047 = vrot.lane.b32.xlu0 %v6724_v12, %s4382_s24  ;;  %3626 = vmatpush1.msra.mxu0 %v2509_v57 }
 0x2bb   : > { %v5991_v27 = vpop.permute.xlu1 %3220 }
 0x2bc   : > { %v5993_v20 = vpop.permute.xlu0 %1959 }
 0x2bd   : > { %v5997_v52 = vsel %vm1963_vm5, %v1958_v37, %v5993_v20  ;;  %3027 = vrot.lane.b32.xlu1 %v6748_v11, %s4382_s24  ;;  %v2344_v11 = vsel %vm2325_vm3, %v5479_v39, %v5553_v33  ;;  %v6770_v37 = vld [vmem:[#allocation51_spill] sm:$0xff] }
 0x2be   : > { %3025 = vrot.lane.b32.xlu0 %v6750_v47, %s4382_s24  ;;  %v2337_v28 = vsel %vm2325_vm3, %v6770_v37, %v5909_v60  ;;  %v2336_v57 = vsel %vm2325_vm3, %v5269_v24, %v6770_v37  ;;  %v6771_v39 = vld [vmem:[#allocation27_spill] sm:$0xff]  ;;  %v6772_v24 = vld [vmem:[#allocation14_spill] sm:$0xff]  ;;  %v2520_v37 = vsel %vm2506_vm2, %v5925_v63, %v5871_v48 }
 0x2bf   : > { %v6003_v45 = vpop.permute.xlu1 %2858 }
 0x2c0   : > { %v6005_v50 = vpop.permute.xlu0 %2315 }
 0x2c1   : > { %v2345_v12 = vsel %vm2325_vm3, %v5553_v33, %v6005_v50  ;;  %3005 = vrot.lane.b32.xlu1 %v6769_v0, %s4382_s24  ;;  %v2329_v33 = vsel %vm2325_vm3, %v6771_v39, %v5814_v56  ;;  %v2328_v0 = vsel %vm2325_vm3, %v5128_v38, %v6771_v39  ;;  %v6775_v39 = vld [vmem:[#allocation23_spill] sm:$0xff] }
 0x2c2   : > { %3627 = vmatprep.subr.mxu0 %v2345_v12  ;;  %3029 = vrot.lane.b32.xlu0 %v6708_v3, %s4382_s24 }
 0x2c3   : > { %3628 = vmatpush1.msra.mxu0 %v2344_v11  ;;  %v2499_v47 = vpop.permute.xlu1 %2498 }
 0x2c4   : > { %3629 = vmatprep.subr.mxu0 %v2337_v28  ;;  %v6020_v55 = vpop.permute.xlu0 %2677  ;;  %v2528_v3 = vsel %vm2506_vm2, %v2499_v47, %v5943_v30  ;;  %v2527_v12 = vsel %vm2506_vm2, %v2497_v59, %v2499_v47  ;;  %v6773_v59 = vld [vmem:[#allocation72_spill] sm:$0xff]  ;;  %v2519_v28 = vsel %vm2506_vm2, %v5855_v31, %v5925_v63  ;;  %v2511_v63 = vsel %vm2506_vm2, %v5659_v29, %v5730_v26  ;;  %v6776_v29 = vld [vmem:[#allocation65_spill] sm:$0xff] }
 0x2c5   : > { %3630 = vmatpush1.msra.mxu0 %v2336_v57  ;;  %3698 = vmatprep.subr.mxu1 %v2528_v3  ;;  %v2164_v47 = vsel %vm2144_vm4, %v6773_v59, %v5969_v9  ;;  %v2163_v38 = vsel %vm2144_vm4, %v5462_v43, %v6773_v59  ;;  %v6774_v57 = vld [vmem:[#allocation59_spill] sm:$0xff] }
 0x2c6   : > { %3631 = vmatprep.subr.mxu0 %v2329_v33  ;;  %3009 = vrot.lane.b32.xlu1 %v5132_v4, %s4382_s24  ;;  %v2156_v3 = vsel %vm2144_vm4, %v6774_v57, %v5887_v41  ;;  %v2155_v43 = vsel %vm2144_vm4, %v5243_v61, %v6774_v57  ;;  %v2148_v33 = vsel %vm2144_vm4, %v6775_v39, %v5755_v25 }
 0x2c7   : > { %3007 = vrot.lane.b32.xlu0 %v6772_v24, %s4382_s24  ;;  %3632 = vmatpush1.msra.mxu0 %v2328_v0  ;;  %v6038_v11 = vpop.permute.xlu1 %2502  ;;  %v1982_v24 = vsel %vm1963_vm5, %v5347_v35, %v6776_v29 }
 0x2c8   : > { %3699 = vmatpush1.msra.mxu1 %v2527_v12  ;;  %3633 = vmatprep.subr.mxu0 %v2164_v47  ;;  %v6046_v4 = vpop.permute.xlu0 %2319  ;;  %v2512_v12 = vsel %vm2506_vm2, %v5730_v26, %v5641_v15  ;;  %v1983_v26 = vsel %vm1963_vm5, %v6776_v29, %v5941_v58  ;;  %v6786_v29 = vld [vmem:[#allocation8_spill] sm:$0xff] }
 0x2c9   : > { %3700 = vmatprep.subr.mxu1 %v2520_v37  ;;  %3634 = vmatpush1.msra.mxu0 %v2163_v38 }
 0x2ca   : > { %3701 = vmatpush1.msra.mxu1 %v2519_v28  ;;  %3635 = vmatprep.subr.mxu0 %v2156_v3 }
 0x2cb   : > { %3702 = vmatprep.subr.mxu1 %v2512_v12  ;;  %2860 = vrot.lane.b32.xlu1 %v5615_v32, %s4388_s30  ;;  %v1775_v31 = vpop.permute.xlu1 %1774 }
 0x2cc   : > { %3011 = vrot.lane.b32.xlu0 %v5239_v49, %s4382_s24  ;;  %3636 = vmatpush1.msra.mxu0 %v2155_v43  ;;  %v6073_v0 = vpop.permute.xlu0 %2301  ;;  %v6077_v32 = vsel %vm1782_vm6, %v5949_v1, %v1775_v31  ;;  %v6081_v61 = vsel %vm1782_vm6, %v1775_v31, %v5955_v14  ;;  %v2147_v49 = vsel %vm2144_vm4, %v5091_v23, %v6775_v39  ;;  %v6777_v23 = vld [vmem:[#allocation33_spill] sm:$0xff] }
 0x2cd   : > { %3703 = vmatpush1.msra.mxu1 %v2511_v63  ;;  %3637 = vmatprep.subr.mxu0 %v2148_v33  ;;  %v1975_v47 = vsel %vm1963_vm5, %v6777_v23, %v5828_v54  ;;  %v1974_v35 = vsel %vm1963_vm5, %v5183_v51, %v6777_v23  ;;  %v6779_v51 = vld [vmem:[#allocation71_spill] sm:$0xff]  ;;  %v6787_v23 = vld [vmem:[#allocation42_spill] sm:$0xff] }
 0x2ce   : > { %3638 = vmatpush1.msra.mxu0 %v2147_v49  ;;  %v1802_v28 = vsel %vm1782_vm6, %v6779_v51, %v5949_v1  ;;  %v6783_v49 = vld [vmem:[#allocation78_spill] sm:$0xff] }
 0x2cf   : > { %3639 = vmatprep.subr.mxu0 %v1983_v26  ;;  %2864 = vrot.lane.b32.xlu1 %v5639_v7, %s4388_s30  ;;  %v6094_v59 = vpop.permute.xlu1 %1778 }
 0x2d0   : > { %2862 = vrot.lane.b32.xlu0 %v5527_v44, %s4388_s30  ;;  %3640 = vmatpush1.msra.mxu0 %v1982_v24  ;;  %v6104_v58 = vsel %vm1782_vm6, %v5955_v14, %v6094_v59  ;;  %v6106_v7 = vpop.permute.xlu0 %2468  ;;  %v6778_v44 = vld [vmem:[#allocation7_spill] sm:$0xff] }
 0x2d1   : > { %3641 = vmatprep.subr.mxu0 %v1975_v47  ;;  %v1967_v37 = vsel %vm1963_vm5, %v6778_v44, %v5608_v8  ;;  %v1966_v14 = vsel %vm1963_vm5, %v5054_v10, %v6778_v44  ;;  %v6780_v10 = vld [vmem:[#allocation45_spill] sm:$0xff]  ;;  %v6788_v47 = vld [vmem:[#allocation82_spill] sm:$0xff] }
 0x2d2   : > { %3642 = vmatpush1.msra.mxu0 %v1974_v35  ;;  %v1794_v3 = vsel %vm1782_vm6, %v6780_v10, %v5849_v2  ;;  %v1793_v1 = vsel %vm1782_vm6, %v5231_v42, %v6780_v10  ;;  %v6792_v10 = vld [vmem:[#allocation37_spill] sm:$0xff] }
 0x2d3   : > { %3643 = vmatprep.subr.mxu0 %v1967_v37  ;;  %2842 = vrot.lane.b32.xlu1 %v5483_v18, %s4388_s30  ;;  %v6119_v38 = vpop.permute.xlu1 %2466  ;;  %v1801_v18 = vsel %vm1782_vm6, %v5424_v13, %v6779_v51  ;;  %v6781_v13 = vld [vmem:[#allocation16_spill] sm:$0xff] }
 0x2d4   : > { %2866 = vrot.lane.b32.xlu0 %v5801_v19, %s4388_s30  ;;  %3644 = vmatpush1.msra.mxu0 %v1966_v14  ;;  %v6126_v57 = vpop.permute.xlu0 %1744  ;;  %v1786_v12 = vsel %vm1782_vm6, %v6781_v13, %v5664_v21  ;;  %v1785_v42 = vsel %vm1782_vm6, %v5075_v16, %v6781_v13  ;;  %v6782_v16 = vld [vmem:[#allocation61_spill] sm:$0xff]  ;;  %v6790_v51 = vld [vmem:[#allocation56_spill] sm:$0xff] }
 0x2d5   : > { %3645 = vmatprep.subr.mxu0 %v1802_v28  ;;  %v3242_v39 = vsel %vm3230_vm10, %v6782_v16, %v5899_v62 }
 0x2d6   : > { %3646 = vmatpush1.msra.mxu0 %v1801_v18  ;;  %v6791_v18 = vld [vmem:[#allocation43_spill] sm:$0xff] }
 0x2d7   : > { %3647 = vmatprep.subr.mxu0 %v1794_v3  ;;  %2846 = vrot.lane.b32.xlu1 %v5492_v6, %s4388_s30  ;;  %v2318_v19 = vpop.permute.xlu1 %2317  ;;  %v3061_v3 = vsel %vm3049_vm11, %v6792_v10, %v6791_v18 }
 0x2d8   : > { %2844 = vrot.lane.b32.xlu0 %v5437_v36, %s4388_s30  ;;  %3648 = vmatpush1.msra.mxu0 %v1793_v1  ;;  %v2346_v43 = vsel %vm2325_vm3, %v6005_v50, %v2318_v19  ;;  %v6146_v63 = vpop.permute.xlu0 %2106  ;;  %v2347_v6 = vsel %vm2325_vm3, %v2318_v19, %v6046_v4  ;;  %v3250_v36 = vsel %vm3230_vm10, %v5558_v5, %v5991_v27  ;;  %v6793_v1 = vld [vmem:[#allocation69_spill] sm:$0xff] }
 0x2d9   : > { %3649 = vmatprep.subr.mxu0 %v1786_v12  ;;  %3704 = vmatprep.subr.mxu1 %v2347_v6  ;;  %v3249_v50 = vsel %vm3230_vm10, %v5477_v46, %v5558_v5  ;;  %v6784_v5 = vld [vmem:[#allocation28_spill] sm:$0xff]  ;;  %v6794_v19 = vld [vmem:[#allocation29_spill] sm:$0xff] }
 0x2da   : > { %3650 = vmatpush1.msra.mxu0 %v1785_v42  ;;  %3705 = vmatpush1.msra.mxu1 %v2346_v43  ;;  %v3234_v46 = vsel %vm3230_vm10, %v6784_v5, %v6783_v49  ;;  %v3233_v26 = vsel %vm3230_vm10, %v6786_v29, %v6784_v5  ;;  %v3060_v13 = vsel %vm3049_vm11, %v6794_v19, %v6792_v10  ;;  %v6213_v43 = vld [vmem:[%s6504_s2 + $0x10] sm:$0xf]  ;;  %v6795_v6 = vld [vmem:[#allocation77_spill] sm:$0xff]  ;;  %v6796_v42 = vld [vmem:[#allocation75_spill] sm:$0xff] }
 0x2db   : > { %3661 = vmatprep.subr.mxu0 %v3250_v36  ;;  %2824 = vrot.lane.b32.xlu1 %v6731_v22, %s4388_s30  ;;  %v6161_v31 = vpop.permute.xlu1 %2321  ;;  %v3241_v22 = vsel %vm3230_vm10, %v5252_v34, %v6782_v16  ;;  %v6789_v34 = vld [vmem:[#allocation67_spill] sm:$0xff]  ;;  %v6799_v5 = vld [vmem:[#allocation74_spill] sm:$0xff]  ;;  %v6801_v29 = vld [vmem:[#allocation68_spill] sm:$0xff] }
 0x2dc   : > { %2848 = vrot.lane.b32.xlu0 %v5796_v40, %s4388_s30  ;;  %3662 = vmatpush2.msra.mxu0 %v3249_v50  ;;  %v6168_v33 = vpop.permute.xlu0 %2649  ;;  %v6785_v40 = vld [vmem:[#allocation48_spill] sm:$0xff]  ;;  %v3069_v35 = vsel %vm3049_vm11, %v6789_v34, %v6788_v47  ;;  %v3068_v28 = vsel %vm3049_vm11, %v6790_v51, %v6789_v34  ;;  %v6797_v36 = vld [vmem:[#allocation11_spill] sm:$0xff]  ;;  %v6803_v34 = vld [vmem:[#allocation21_spill] sm:$0xff] }
 0x2dd   : > { %3663 = vmatprep.subr.mxu0 %v3242_v39  ;;  %v3053_v50 = vsel %vm3049_vm11, %v6797_v36, %v6796_v42  ;;  %v6798_v39 = vld [vmem:[#allocation4_spill] sm:$0xff]  ;;  %v6805_v51 = vld [vmem:[#allocation38_spill] sm:$0xff]  ;;  %v6806_v10 = vld [vmem:[#allocation55_spill] sm:$0xff] }
 0x2de   : > { %3664 = vmatpush2.msra.mxu0 %v3241_v22  ;;  %v3052_v22 = vsel %vm3049_vm11, %v6798_v39, %v6797_v36  ;;  %v6811_v39 = vld [vmem:[#allocation46_spill] sm:$0xff] }
 0x2df   : > { %3665 = vmatprep.subr.mxu0 %v3234_v46  ;;  %2828 = vrot.lane.b32.xlu1 %v6785_v40, %s4388_s30  ;;  %v2300_v24 = vpop.permute.xlu1 %2299  ;;  %v2888_v46 = vsel %vm2868_vm12, %v6799_v5, %v6003_v45  ;;  %v6800_v40 = vld [vmem:[#allocation40_spill] sm:$0xff] }
 0x2e0   : > { %2826 = vrot.lane.b32.xlu0 %v6787_v23, %s4388_s30  ;;  %3666 = vmatpush2.msra.mxu0 %v3233_v26  ;;  %v2338_v44 = vsel %vm2325_vm3, %v5909_v60, %v2300_v24  ;;  %v6188_v37 = vpop.permute.xlu0 %1943  ;;  %v2339_v14 = vsel %vm2325_vm3, %v2300_v24, %v6073_v0  ;;  %v6201_v60 = vld [vmem:[%s6504_s2 + $0x18] sm:$0xf]  ;;  %v2887_v26 = vsel %vm2868_vm12, %v6801_v29, %v6799_v5 }
 0x2e1   : > { %3667 = vmatprep.subr.mxu0 %v3069_v35  ;;  %3706 = vmatprep.subr.mxu1 %v2339_v14  ;;  %v6802_v23 = vld [vmem:[#allocation39_spill] sm:$0xff]  ;;  %v6804_v35 = vld [vmem:[#allocation64_spill] sm:$0xff] }
 0x2e2   : > { %3668 = vmatpush2.msra.mxu0 %v3068_v28  ;;  %3707 = vmatpush1.msra.mxu1 %v2338_v44  ;;  %v2880_v44 = vsel %vm2868_vm12, %v6804_v35, %v6803_v34  ;;  %v2879_v28 = vsel %vm2868_vm12, %v6805_v51, %v6804_v35  ;;  %v6817_v51 = vld [vmem:[#allocation44_spill] sm:$0xff] }
 0x2e3   : > { %3669 = vmatprep.subr.mxu0 %v3061_v3  ;;  %2679 = vrot.lane.b32.xlu1 %v6793_v1, %s4384_s26  ;;  %v6208_v12 = vpop.permute.xlu1 %2303  ;;  %v6807_v3 = vld [vmem:[#allocation26_spill] sm:$0xff]  ;;  %v6808_v1 = vld [vmem:[#allocation32_spill] sm:$0xff] }
 0x2e4   : > { %2830 = vrot.lane.b32.xlu0 %v6795_v6, %s4388_s30  ;;  %3670 = vmatpush2.msra.mxu0 %v3060_v13  ;;  %v2487_v16 = vpop.permute.xlu0 %2486  ;;  %v2872_v19 = vsel %vm2868_vm12, %v6808_v1, %v6807_v3  ;;  %v6809_v13 = vld [vmem:[#allocation9_spill] sm:$0xff]  ;;  %v6810_v6 = vld [vmem:[#allocation15_spill] sm:$0xff] }
 0x2e5   : > { %3671 = vmatprep.subr.mxu0 %v3053_v50  ;;  %4096 = vmatprep.mubr.msk.f32.mxu1 %vm3535_vm1, %v6201_v60  ;;  %v2871_v36 = vsel %vm2868_vm12, %v6810_v6, %v6808_v1  ;;  %v6818_v1 = vld [vmem:[#allocation22_spill] sm:$0xff] }
 0x2e6   : > { %3672 = vmatpush2.msra.mxu0 %v3052_v22  ;;  %3613 = vmatmul.mubr.f32.gmra.mxu1 %v6213_v43  ;;  %v6812_v22 = vld [vmem:[#allocation73_spill] sm:$0xff] }
 0x2e7   : > { %3673 = vmatprep.subr.mxu0 %v2888_v46  ;;  %2683 = vrot.lane.b32.xlu1 %v6800_v40, %s4384_s26  ;;  %v6234_v24 = vpop.permute.xlu1 %1925  ;;  %v2707_v5 = vsel %vm2687_vm8, %v6812_v22, %v6020_v55  ;;  %v6813_v40 = vld [vmem:[#allocation70_spill] sm:$0xff] }
 0x2e8   : > { %2681 = vrot.lane.b32.xlu0 %v6802_v23, %s4384_s26  ;;  %3674 = vmatpush2.msra.mxu0 %v2887_v26  ;;  %v2505_v14 = vpop.permute.xlu0 %2504  ;;  %v2706_v29 = vsel %vm2687_vm8, %v6813_v40, %v6812_v22  ;;  %v6814_v26 = vld [vmem:[#allocation19_spill] sm:$0xff]  ;;  %v6815_v23 = vld [vmem:[#allocation60_spill] sm:$0xff]  ;;  %v2529_v40 = vsel %vm2506_vm2, %v5943_v30, %v6038_v11 }
 0x2e9   : > { %3675 = vmatprep.subr.mxu0 %v2880_v44  ;;  %4099 = vmatprep.mubr.msk.f32.mxu1 %vm3535_vm1, %v6806_v10  ;;  %v2699_v35 = vsel %vm2687_vm8, %v6815_v23, %v6814_v26  ;;  %v6816_v44 = vld [vmem:[#allocation54_spill] sm:$0xff] }
 0x2ea   : > { %3676 = vmatpush2.msra.mxu0 %v2879_v28  ;;  %v2698_v28 = vsel %vm2687_vm8, %v6817_v51, %v6815_v23  ;;  %v6822_v23 = vld [vmem:[#allocation18_spill] sm:$0xff] }
 0x2eb   : > { %3677 = vmatprep.subr.mxu0 %v2872_v19  ;;  %2661 = vrot.lane.b32.xlu1 %v6809_v13, %s4384_s26  ;;  %v6254_v50 = vpop.permute.xlu1 %1762  ;;  %v6819_v19 = vld [vmem:[#allocation20_spill] sm:$0xff] }
 0x2ec   : > { %2685 = vrot.lane.b32.xlu0 %v6811_v39, %s4384_s26  ;;  %3678 = vmatpush2.msra.mxu0 %v2871_v36  ;;  %v6261_v46 = vpop.permute.xlu0 %1780  ;;  %v2695_v13 = vsel %vm2687_vm8, %v6819_v19, %v6168_v33  ;;  %v6820_v36 = vld [vmem:[#allocation6_spill] sm:$0xff]  ;;  %v6821_v39 = vld [vmem:[#allocation31_spill] sm:$0xff] }
 0x2ed   : > { %3679 = vmatprep.subr.mxu0 %v2707_v5  ;;  %v2694_v22 = vsel %vm2687_vm8, %v6821_v39, %v6819_v19  ;;  %v2530_v5 = vsel %vm2506_vm2, %v6038_v11, %v2505_v14  ;;  %v3523_v14 = vld [vmem:[%s6505_s3] sm:$0xff]  ;;  %v2514_v11 = vsel %vm2506_vm2, %v6119_v38, %v6106_v7 }
 0x2ee   : > { %3680 = vmatpush2.msra.mxu0 %v2706_v29  ;;  %v4389_v29 = vmov 0  }
 0x2ef   : > { %3681 = vmatprep.subr.mxu0 %v2699_v35  ;;  %2665 = vrot.lane.b32.xlu1 %v6816_v44, %s4384_s26  ;;  %v6274_v10 = vpop.permute.xlu1 %1961  ;;  %v6823_v35 = vld [vmem:[#allocation81_spill] sm:$0xff] }
 0x2f0   : > { %2663 = vrot.lane.b32.xlu0 %v6818_v1, %s4384_s26  ;;  %3682 = vmatpush2.msra.mxu0 %v2698_v28  ;;  %v2324_v6 = vpop.permute.xlu0 %2323  ;;  %v2522_v44 = vsel %vm2506_vm2, %v6823_v35, %v2487_v16  ;;  %v2521_v30 = vsel %vm2506_vm2, %v5871_v48, %v6823_v35  ;;  %v4369_v16 = vld [vmem:[%s6504_s2 + $0x8] sm:$0xff]  ;;  %v2513_v48 = vsel %vm2506_vm2, %v5641_v15, %v6119_v38 }
 0x2f1   : > { %3773 = vmatprep.subr.mxu0 %v2695_v13  ;;  %3684 = vmatmul.mubr.f32.vlgmr.msra.gmra.mxu0 %v6820_v36  ;;  %v3524_v28 = vld [vmem:[%s6505_s3 + $0x8] sm:$0xf]  ;;  %v2349_v7 = vsel %vm2325_vm3, %v6161_v31, %v2324_v6  ;;  %v2348_v13 = vsel %vm2325_vm3, %v6046_v4, %v6161_v31  ;;  %v2340_v6 = vsel %vm2325_vm3, %v6073_v0, %v6208_v12 }
 0x2f2   : > { %3774 = vmatpush1.msra.mxu0 %v2694_v22  ;;  %4098 = vmatprep.mubr.msk.f32.mxu0 %vm3535_vm1, %v6201_v60 }
 0x2f3   : > { %3775 = vmatprep.subr.mxu0 %v2530_v5  ;;  %v2282_v33 = vpop.permute.xlu1 %2281  ;;  %4154 = vset.pattern.permute.xlu1 %v4389_v29 }
 0x2f4   : > { %2667 = vrot.lane.b32.xlu0 %v6822_v23, %s4384_s26  ;;  %3776 = vmatpush1.msra.mxu0 %v2529_v40  ;;  %v2306_v51 = vpop.permute.xlu0 %2305  ;;  %v2330_v15 = vsel %vm2325_vm3, %v5814_v56, %v2282_v33  ;;  %s6481_s26 = scalar_lea.vmem %s6506_s4, %s4105_s23 }
 0x2f5   : > { %3777 = vmatprep.subr.mxu0 %v2522_v44  ;;  %3690 = vmatmul.mubr.f32.gmra.mxu0 %v6213_v43  ;;  %v2341_v38 = vsel %vm2325_vm3, %v6208_v12, %v2306_v51 }
 0x2f6   : > { %3778 = vmatpush1.msra.mxu0 %v2521_v30  ;;  %4101 = vmatprep.mubr.msk.f32.mxu0 %vm3535_vm1, %v4369_v16  ;;  %v6824_v30 = vld [vmem:[#allocation10_spill] sm:$0xff] }
 0x2f7   : > { %3779 = vmatprep.subr.mxu0 %v2514_v11  ;;  %v2286_v1 = vpop.permute.xlu1 %2285  ;;  %3527 = vperm.xlu1 %4154, %v3523_v14   ;;  %v6825_v11 = vld [vmem:[#allocation34_spill] sm:$0xff] }
 0x2f8   : > { %3780 = vmatpush1.msra.mxu0 %v2513_v48  ;;  %v2284_v19 = vpop.permute.xlu0 %2283  ;;  %4155 = vset.pattern.permute.xlu0 %v4389_v29  ;;  %v2150_v16 = vsel %vm2144_vm4, %v6825_v11, %v6824_v30  ;;  %v2149_v48 = vsel %vm2144_vm4, %v5755_v25, %v6825_v11 }
 0x2f9   : > { %3781 = vmatprep.subr.mxu0 %v2349_v7  ;;  %v2331_v36 = vsel %vm2325_vm3, %v2282_v33, %v2284_v19  ;;  %3532 = vperm.xlu0 %4155, %v3524_v28   ;;  %v2332_v22 = vsel %vm2325_vm3, %v2284_v19, %v2286_v1  ;;  %v6826_v19 = vld [vmem:[#allocation58_spill] sm:$0xff] }
 0x2fa   : > { %3782 = vmatpush1.msra.mxu0 %v2348_v13  ;;  %3708 = vmatprep.subr.mxu1 %v2331_v36  ;;  %v6827_v13 = vld [vmem:[#allocation50_spill] sm:$0xff] }
 0x2fb   : > { %3783 = vmatprep.subr.mxu0 %v2341_v38  ;;  %3709 = vmatpush1.msra.mxu1 %v2330_v15  ;;  %v2137_v39 = vpop.permute.xlu1 %2136  ;;  %v1977_v36 = vsel %vm1963_vm5, %v6827_v13, %v6826_v19  ;;  %v6828_v15 = vld [vmem:[#allocation63_spill] sm:$0xff] }
 0x2fc   : > { %3784 = vmatpush1.msra.mxu0 %v2340_v6  ;;  %v2288_v4 = vpop.permute.xlu0 %2287  ;;  %v2165_v33 = vsel %vm2144_vm4, %v5969_v9, %v2137_v39  ;;  %v2152_v25 = vsel %vm2144_vm4, %v6828_v15, %v6146_v63  ;;  %v6829_v6 = vld [vmem:[#allocation76_spill] sm:$0xff]  ;;  %v1987_v63 = vsel %vm1963_vm5, %v5993_v20, %v6274_v10  ;;  %v6833_v10 = vld [vmem:[#allocation79_spill] sm:$0xff] }
 0x2fd   : > { %v2333_v31 = vsel %vm2325_vm3, %v2286_v1, %v2288_v4 }
 0x2fe   : > { %3785 = vmatprep.subr.mxu0 %v2333_v31 }
 0x2ff   : > { %3786 = vmatpush1.msra.mxu0 %v2332_v22  ;;  %v2141_v56 = vpop.permute.xlu1 %2140  ;;  %v6831_v22 = vld [vmem:[#allocation47_spill] sm:$0xff] }
 0x300   : > { %v2139_v5 = vpop.permute.xlu0 %2138  ;;  %v1978_v20 = vsel %vm1963_vm5, %v6826_v19, %v6831_v22 }
 0x301   : > { %v2166_v40 = vsel %vm2144_vm4, %v2137_v39, %v2139_v5  ;;  %v2167_v23 = vsel %vm2144_vm4, %v2139_v5, %v2141_v56  ;;  %v6830_v39 = vld [vmem:[#allocation17_spill] sm:$0xff] }
 0x302   : > { %3710 = vmatprep.subr.mxu1 %v2166_v40  ;;  %v1969_v4 = vsel %vm1963_vm5, %v6830_v39, %v6829_v6  ;;  %v6834_v40 = vld [vmem:[#allocation62_spill] sm:$0xff] }
 0x303   : > { %3711 = vmatpush1.msra.mxu1 %v2165_v33  ;;  %v2119_v0 = vpop.permute.xlu1 %2118  ;;  %v1971_v33 = vsel %vm1963_vm5, %v6834_v40, %v6234_v24  ;;  %v1806_v24 = vsel %vm1782_vm6, %v6094_v59, %v6261_v46  ;;  %v6838_v46 = vld [vmem:[#allocation30_spill] sm:$0xff] }
 0x304   : > { %v2143_v12 = vpop.permute.xlu0 %2142  ;;  %v2157_v14 = vsel %vm2144_vm4, %v5887_v41, %v2119_v0 }
 0x305   : > { %v2168_v29 = vsel %vm2144_vm4, %v2141_v56, %v2143_v12  ;;  %v1979_v56 = vsel %vm1963_vm5, %v6831_v22, %v6188_v37  ;;  %v1970_v37 = vsel %vm1963_vm5, %v6829_v6, %v6834_v40  ;;  %v6836_v12 = vld [vmem:[#allocation35_spill] sm:$0xff] }
 0x306   : > { %3787 = vmatprep.subr.mxu0 %v2168_v29 }
 0x307   : > { %3788 = vmatpush1.msra.mxu0 %v2167_v23  ;;  %v2123_v35 = vpop.permute.xlu1 %2122 }
 0x308   : > { %v2121_v44 = vpop.permute.xlu0 %2120 }
 0x309   : > { %v2158_v51 = vsel %vm2144_vm4, %v2119_v0, %v2121_v44  ;;  %v2159_v7 = vsel %vm2144_vm4, %v2121_v44, %v2123_v35  ;;  %v6835_v0 = vld [vmem:[#allocation41_spill] sm:$0xff]  ;;  %v6837_v44 = vld [vmem:[#allocation80_spill] sm:$0xff] }
 0x30a   : > { %3712 = vmatprep.subr.mxu1 %v2158_v51  ;;  %v1788_v29 = vsel %vm1782_vm6, %v6836_v12, %v6835_v0  ;;  %v1798_v51 = vsel %vm1782_vm6, %v6837_v44, %v6254_v50 }
 0x30b   : > { %3713 = vmatpush1.msra.mxu1 %v2157_v14  ;;  %v3223_v9 = vpop.permute.xlu1 %3222 }
 0x30c   : > { %3714 = vmatprep.subr.mxu1 %v2150_v16  ;;  %v2125_v28 = vpop.permute.xlu0 %2124  ;;  %v3251_v14 = vsel %vm3230_vm10, %v5991_v27, %v3223_v9 }
 0x30d   : > { %3715 = vmatpush1.msra.mxu1 %v2149_v48  ;;  %v2160_v1 = vsel %vm2144_vm4, %v2123_v35, %v2125_v28 }
 0x30e   : > { %3716 = vmatprep.subr.mxu1 %v5987_v53  ;;  %3789 = vmatprep.subr.mxu0 %v2160_v1  ;;  %v1976_v53 = vsel %vm1963_vm5, %v5828_v54, %v6827_v13  ;;  %v1968_v54 = vsel %vm1963_vm5, %v5608_v8, %v6830_v39  ;;  %v6832_v8 = vld [vmem:[#allocation24_spill] sm:$0xff] }
 0x30f   : > { %3717 = vmatpush1.msra.mxu1 %v5979_v17  ;;  %3790 = vmatpush1.msra.mxu0 %v2159_v7  ;;  %v3227_v41 = vpop.permute.xlu1 %3226  ;;  %v2151_v17 = vsel %vm2144_vm4, %v6824_v30, %v6828_v15  ;;  %v1797_v59 = vsel %vm1782_vm6, %v6832_v8, %v6837_v44  ;;  %v1790_v30 = vsel %vm1782_vm6, %v6838_v46, %v6126_v57 }
 0x310   : > { %3718 = vmatprep.subr.mxu1 %v1977_v36  ;;  %3791 = vmatprep.subr.mxu0 %v2152_v25  ;;  %v3225_v38 = vpop.permute.xlu0 %3224 }
 0x311   : > { %3719 = vmatpush1.msra.mxu1 %v1976_v53  ;;  %3792 = vmatpush1.msra.mxu0 %v2151_v17  ;;  %v3252_v35 = vsel %vm3230_vm10, %v3223_v9, %v3225_v38  ;;  %v1789_v9 = vsel %vm1782_vm6, %v6835_v0, %v6838_v46  ;;  %v3253_v16 = vsel %vm3230_vm10, %v3225_v38, %v3227_v41 }
 0x312   : > { %3720 = vmatprep.subr.mxu1 %v1969_v4  ;;  %3793 = vmatprep.subr.mxu0 %v1987_v63 }
 0x313   : > { %3721 = vmatpush1.msra.mxu1 %v1968_v54  ;;  %3794 = vmatpush1.msra.mxu0 %v5997_v52  ;;  %v3205_v31 = vpop.permute.xlu1 %3204  ;;  %v1796_v52 = vsel %vm1782_vm6, %v6833_v10, %v6832_v8 }
 0x314   : > { %3722 = vmatprep.subr.mxu1 %v6081_v61  ;;  %3795 = vmatprep.subr.mxu0 %v1979_v56  ;;  %v3229_v5 = vpop.permute.xlu0 %3228  ;;  %v1795_v61 = vsel %vm1782_vm6, %v5849_v2, %v6833_v10  ;;  %v1787_v2 = vsel %vm1782_vm6, %v5664_v21, %v6836_v12  ;;  %v3243_v50 = vsel %vm3230_vm10, %v5899_v62, %v3205_v31 }
 0x315   : > { %3723 = vmatpush1.msra.mxu1 %v6077_v32  ;;  %3796 = vmatpush1.msra.mxu0 %v1978_v20  ;;  %v3254_v11 = vsel %vm3230_vm10, %v3227_v41, %v3229_v5 }
 0x316   : > { %3724 = vmatprep.subr.mxu1 %v1796_v52  ;;  %3797 = vmatprep.subr.mxu0 %v1971_v33 }
 0x317   : > { %3725 = vmatpush1.msra.mxu1 %v1795_v61  ;;  %3798 = vmatpush1.msra.mxu0 %v1970_v37  ;;  %v3209_v32 = vpop.permute.xlu1 %3208 }
 0x318   : > { %3726 = vmatprep.subr.mxu1 %v1788_v29  ;;  %3799 = vmatprep.subr.mxu0 %v1806_v24  ;;  %v3207_v23 = vpop.permute.xlu0 %3206 }
 0x319   : > { %3727 = vmatpush1.msra.mxu1 %v1787_v2  ;;  %3800 = vmatpush1.msra.mxu0 %v6104_v58  ;;  %v3244_v58 = vsel %vm3230_vm10, %v3205_v31, %v3207_v23  ;;  %v3245_v62 = vsel %vm3230_vm10, %v3207_v23, %v3209_v32 }
 0x31a   : > { %3738 = vmatprep.subr.mxu1 %v3252_v35  ;;  %3801 = vmatprep.subr.mxu0 %v1798_v51 }
 0x31b   : > { %3739 = vmatpush2.msra.mxu1 %v3251_v14  ;;  %3802 = vmatpush1.msra.mxu0 %v1797_v59  ;;  %v3187_v21 = vpop.permute.xlu1 %3186 }
 0x31c   : > { %3740 = vmatprep.subr.mxu1 %v3244_v58  ;;  %3803 = vmatprep.subr.mxu0 %v1790_v30  ;;  %v3211_v27 = vpop.permute.xlu0 %3210  ;;  %v3235_v7 = vsel %vm3230_vm10, %v6783_v49, %v3187_v21 }
 0x31d   : > { %3741 = vmatpush2.msra.mxu1 %v3243_v50  ;;  %3804 = vmatpush1.msra.mxu0 %v1789_v9  ;;  %v3246_v57 = vsel %vm3230_vm10, %v3209_v32, %v3211_v27 }
 0x31e   : > { %3815 = vmatprep.subr.mxu0 %v3254_v11 }
 0x31f   : > { %3816 = vmatpush2.msra.mxu0 %v3253_v16  ;;  %v3191_v28 = vpop.permute.xlu1 %3190 }
 0x320   : > { %3817 = vmatprep.subr.mxu0 %v3246_v57  ;;  %v3189_v48 = vpop.permute.xlu0 %3188 }
 0x321   : > { %3818 = vmatpush2.msra.mxu0 %v3245_v62  ;;  %v3236_v1 = vsel %vm3230_vm10, %v3187_v21, %v3189_v48  ;;  %v3237_v36 = vsel %vm3230_vm10, %v3189_v48, %v3191_v28 }
 0x322   : > { %3742 = vmatprep.subr.mxu1 %v3236_v1 }
 0x323   : > { %3743 = vmatpush2.msra.mxu1 %v3235_v7  ;;  %v3042_v19 = vpop.permute.xlu1 %3041 }
 0x324   : > { %v3193_v13 = vpop.permute.xlu0 %3192  ;;  %v3070_v53 = vsel %vm3049_vm11, %v6788_v47, %v3042_v19 }
 0x325   : > { %v3238_v41 = vsel %vm3230_vm10, %v3191_v28, %v3193_v13 }
 0x326   : > { %3819 = vmatprep.subr.mxu0 %v3238_v41 }
 0x327   : > { %3820 = vmatpush2.msra.mxu0 %v3237_v36  ;;  %v3046_v15 = vpop.permute.xlu1 %3045 }
 0x328   : > { %v3044_v25 = vpop.permute.xlu0 %3043 }
 0x329   : > { %v3071_v38 = vsel %vm3049_vm11, %v3042_v19, %v3044_v25  ;;  %v3072_v39 = vsel %vm3049_vm11, %v3044_v25, %v3046_v15 }
 0x32a   : > { %3744 = vmatprep.subr.mxu1 %v3071_v38 }
 0x32b   : > { %3745 = vmatpush2.msra.mxu1 %v3070_v53  ;;  %v3024_v49 = vpop.permute.xlu1 %3023 }
 0x32c   : > { %v3048_v17 = vpop.permute.xlu0 %3047  ;;  %v3062_v31 = vsel %vm3049_vm11, %v6791_v18, %v3024_v49 }
 0x32d   : > { %v3073_v6 = vsel %vm3049_vm11, %v3046_v15, %v3048_v17  ;;  %v4370_v15 = vld [vmem:[%s6504_s2] sm:$0xff] }
 0x32e   : > { %3821 = vmatprep.subr.mxu0 %v3073_v6 }
 0x32f   : > { %3822 = vmatpush2.msra.mxu0 %v3072_v39  ;;  %v3028_v4 = vpop.permute.xlu1 %3027 }
 0x330   : > { %v3026_v63 = vpop.permute.xlu0 %3025 }
 0x331   : > { %v3063_v54 = vsel %vm3049_vm11, %v3024_v49, %v3026_v63  ;;  %v3064_v5 = vsel %vm3049_vm11, %v3026_v63, %v3028_v4 }
 0x332   : > { %3746 = vmatprep.subr.mxu1 %v3063_v54 }
 0x333   : > { %3747 = vmatpush2.msra.mxu1 %v3062_v31  ;;  %v3006_v47 = vpop.permute.xlu1 %3005 }
 0x334   : > { %v3030_v22 = vpop.permute.xlu0 %3029  ;;  %v3054_v52 = vsel %vm3049_vm11, %v6796_v42, %v3006_v47 }
 0x335   : > { %v3065_v56 = vsel %vm3049_vm11, %v3028_v4, %v3030_v22 }
 0x336   : > { %3823 = vmatprep.subr.mxu0 %v3065_v56 }
 0x337   : > { %3824 = vmatpush2.msra.mxu0 %v3064_v5 }
 0x338   : > { %v3010_v20 = vpop.permute.xlu1 %3009 }
 0x339   : > { %v3008_v8 = vpop.permute.xlu0 %3007 }
 0x33a   : > { %v3055_v10 = vsel %vm3049_vm11, %v3006_v47, %v3008_v8  ;;  %v3056_v61 = vsel %vm3049_vm11, %v3008_v8, %v3010_v20 }
 0x33b   : > { %3748 = vmatprep.subr.mxu1 %v3055_v10 }
 0x33c   : > { %3749 = vmatpush2.msra.mxu1 %v3054_v52 }
 0x33d   : > { %v2861_v18 = vpop.permute.xlu1 %2860 }
 0x33e   : > { %v3012_v40 = vpop.permute.xlu0 %3011  ;;  %v2889_v12 = vsel %vm2868_vm12, %v6003_v45, %v2861_v18 }
 0x33f   : > { %v3057_v33 = vsel %vm3049_vm11, %v3010_v20, %v3012_v40 }
 0x340   : > { %3825 = vmatprep.subr.mxu0 %v3057_v33 }
 0x341   : > { %3826 = vmatpush2.msra.mxu0 %v3056_v61  ;;  %v2865_v37 = vpop.permute.xlu1 %2864 }
 0x342   : > { %v2863_v32 = vpop.permute.xlu0 %2862 }
 0x343   : > { %v2890_v0 = vsel %vm2868_vm12, %v2861_v18, %v2863_v32  ;;  %v2891_v23 = vsel %vm2868_vm12, %v2863_v32, %v2865_v37 }
 0x344   : > { %3750 = vmatprep.subr.mxu1 %v2890_v0 }
 0x345   : > { %3751 = vmatpush2.msra.mxu1 %v2889_v12  ;;  %v2843_v42 = vpop.permute.xlu1 %2842 }
 0x346   : > { %v2867_v29 = vpop.permute.xlu0 %2866  ;;  %v2881_v51 = vsel %vm2868_vm12, %v6803_v34, %v2843_v42 }
 0x347   : > { %v2892_v24 = vsel %vm2868_vm12, %v2865_v37, %v2867_v29 }
 0x348   : > { %3827 = vmatprep.subr.mxu0 %v2892_v24 }
 0x349   : > { %3828 = vmatpush2.msra.mxu0 %v2891_v23  ;;  %v2847_v2 = vpop.permute.xlu1 %2846 }
 0x34a   : > { %v2845_v35 = vpop.permute.xlu0 %2844 }
 0x34b   : > { %v2882_v44 = vsel %vm2868_vm12, %v2843_v42, %v2845_v35  ;;  %v2883_v21 = vsel %vm2868_vm12, %v2845_v35, %v2847_v2 }
 0x34c   : > { %3752 = vmatprep.subr.mxu1 %v2882_v44 }
 0x34d   : > { %3753 = vmatpush2.msra.mxu1 %v2881_v51  ;;  %v2825_v45 = vpop.permute.xlu1 %2824 }
 0x34e   : > { %v2849_v14 = vpop.permute.xlu0 %2848  ;;  %v2873_v50 = vsel %vm2868_vm12, %v6807_v3, %v2825_v45 }
 0x34f   : > { %v2884_v59 = vsel %vm2868_vm12, %v2847_v2, %v2849_v14 }
 0x350   : > { %3829 = vmatprep.subr.mxu0 %v2884_v59 }
 0x351   : > { %3830 = vmatpush2.msra.mxu0 %v2883_v21  ;;  %v2829_v58 = vpop.permute.xlu1 %2828 }
 0x352   : > { %v2827_v46 = vpop.permute.xlu0 %2826 }
 0x353   : > { %v2874_v30 = vsel %vm2868_vm12, %v2825_v45, %v2827_v46  ;;  %v2875_v11 = vsel %vm2868_vm12, %v2827_v46, %v2829_v58 }
 0x354   : > { %3754 = vmatprep.subr.mxu1 %v2874_v30 }
 0x355   : > { %3755 = vmatpush2.msra.mxu1 %v2873_v50  ;;  %v2680_v34 = vpop.permute.xlu1 %2679 }
 0x356   : > { %v2831_v27 = vpop.permute.xlu0 %2830  ;;  %v2708_v62 = vsel %vm2687_vm8, %v6020_v55, %v2680_v34 }
 0x357   : > { %v2876_v9 = vsel %vm2868_vm12, %v2829_v58, %v2831_v27 }
 0x358   : > { %3831 = vmatprep.subr.mxu0 %v2876_v9 }
 0x359   : > { %3832 = vmatpush2.msra.mxu0 %v2875_v11  ;;  %v2684_v16 = vpop.permute.xlu1 %2683 }
 0x35a   : > { %v2682_v28 = vpop.permute.xlu0 %2681 }
 0x35b   : > { %v2709_v57 = vsel %vm2687_vm8, %v2680_v34, %v2682_v28  ;;  %v2710_v7 = vsel %vm2687_vm8, %v2682_v28, %v2684_v16 }
 0x35c   : > { %3756 = vmatprep.subr.mxu1 %v2709_v57 }
 0x35d   : > { %3757 = vmatpush2.msra.mxu1 %v2708_v62  ;;  %v2662_v48 = vpop.permute.xlu1 %2661 }
 0x35e   : > { %v2686_v3 = vpop.permute.xlu0 %2685  ;;  %v2700_v41 = vsel %vm2687_vm8, %v6814_v26, %v2662_v48  ;;  %v3608_v26 = vpop.f32.mrf.mxu1 }
 0x35f   : > { %v2711_v1 = vsel %vm2687_vm8, %v2684_v16, %v2686_v3 }
 0x360   : > { %3833 = vmatprep.subr.mxu0 %v2711_v1  ;;  %v3610_v53 = vpop.f32.mrf.mxu1 }
 0x361   : > { %3834 = vmatpush2.msra.mxu0 %v2710_v7  ;;  %v2666_v36 = vpop.permute.xlu1 %2665 }
 0x362   : > { %v2664_v19 = vpop.permute.xlu0 %2663 }
 0x363   : > { %v2701_v13 = vsel %vm2687_vm8, %v2662_v48, %v2664_v19  ;;  %v2702_v38 = vsel %vm2687_vm8, %v2664_v19, %v2666_v36 }
 0x364   : > { %3758 = vmatprep.subr.mxu1 %v2701_v13 }
 0x365   : > { %3759 = vmatpush2.msra.mxu1 %v2700_v41 }
 0x366   : > { %v2668_v55 = vpop.permute.xlu0 %2667  ;;  %3761 = vmatmul.mubr.f32.vlgmr.msra.gmra.mxu1 %v4370_v15 }
 0x367   : > { %v2703_v25 = vsel %vm2687_vm8, %v2666_v36, %v2668_v55  ;;  %4100 = vmatprep.mubr.msk.f32.mxu1 %vm3535_vm1, %v6201_v60 }
 0x368   : > { %3835 = vmatprep.subr.mxu0 %v2703_v25 }
 0x369   : > { %3836 = vmatpush2.msra.mxu0 %v2702_v38 }
 0x36a   : > { %3838 = vmatmul.mubr.f32.vlgmr.msra.gmra.mxu0 %v4370_v15  ;;  %3767 = vmatmul.mubr.f32.gmra.mxu1 %v6213_v43 }
 0x36b   : > { %4102 = vmatprep.mubr.msk.f32.mxu0 %vm3535_vm1, %v6201_v60 }
 0x36e   : > { %3844 = vmatmul.mubr.f32.gmra.mxu0 %v6213_v43 }
 0x372   : > { %v3528_v49 = vpop.permute.xlu1 %3527 }
 0x373   : > { %v3609_v17 = vadd.f32 %v3608_v26, %v3528_v49  ;;  %v3611_v6 = vadd.f32 %v3610_v53, %v3528_v49 }
 0x374   : > { %v3533_v60 = vpop.permute.xlu0 %3532 }
 0x375   : > { %3850 = vst [vmem:[%s6481_s26] sm:$0xff] %v3609_v17  ;;  %3851 = vst [vmem:[%s6481_s26 + $0x8] sm:$0xff] %v3611_v6 }
 0x3a6   : > { %v3614_v43 = vpop.f32.mrf.mxu1 }
 0x3a7   : > { %v3615_v39 = vadd.f32 %v3614_v43, %v3533_v60 }
 0x3a8   : > { %v3616_v4 = vpop.f32.mrf.mxu1 }
 0x3a9   : > { %v3617_v63 = vadd.f32 %v3616_v4, %v3533_v60  ;;  %3858 = vst [vmem:[%s6481_s26 + $0x40] sm:$0xf] %v3615_v39 }
 0x3ab   : > { %3859 = vst [vmem:[%s6481_s26 + $0x48] sm:$0xf] %v3617_v63 }
 0x3b1   : > { %v3685_v54 = vpop.f32.mrf.mxu0 }
 0x3b2   : > { %v3686_v31 = vadd.f32 %v3685_v54, %v3528_v49 }
 0x3b3   : > { %v3687_v47 = vpop.f32.mrf.mxu0 }
 0x3b4   : > { %v3688_v22 = vadd.f32 %v3687_v47, %v3528_v49  ;;  %3852 = vst [vmem:[%s6481_s26 + $0x10] sm:$0xff] %v3686_v31 }
 0x3b5   : > { %v3691_v56 = vpop.f32.mrf.mxu0 }
 0x3b6   : > { %3853 = vst [vmem:[%s6481_s26 + $0x18] sm:$0xff] %v3688_v22  ;;  %v3692_v5 = vadd.f32 %v3691_v56, %v3533_v60 }
 0x3b7   : > { %v3693_v20 = vpop.f32.mrf.mxu0 }
 0x3b8   : > { %v3694_v8 = vadd.f32 %v3693_v20, %v3533_v60  ;;  %3860 = vst [vmem:[%s6481_s26 + $0x50] sm:$0xf] %v3692_v5 }
 0x3ba   : > { %3861 = vst [vmem:[%s6481_s26 + $0x58] sm:$0xf] %v3694_v8 }
 0x426   : > { %v3762_v10 = vpop.f32.mrf.mxu1 }
 0x427   : > { %v3763_v52 = vadd.f32 %v3762_v10, %v3528_v49 }
 0x428   : > { %v3764_v18 = vpop.f32.mrf.mxu1 }
 0x429   : > { %3854 = vst [vmem:[%s6481_s26 + $0x20] sm:$0xff] %v3763_v52  ;;  %v3765_v40 = vadd.f32 %v3764_v18, %v3528_v49 }
 0x42a   : > { %v3839_v33 = vpop.f32.mrf.mxu0  ;;  %v3768_v61 = vpop.f32.mrf.mxu1 }
 0x42b   : > { %3855 = vst [vmem:[%s6481_s26 + $0x28] sm:$0xff] %v3765_v40  ;;  %v3840_v37 = vadd.f32 %v3839_v33, %v3528_v49  ;;  %v3769_v32 = vadd.f32 %v3768_v61, %v3533_v60 }
 0x42c   : > { %v3841_v0 = vpop.f32.mrf.mxu0  ;;  %v3770_v12 = vpop.f32.mrf.mxu1 }
 0x42d   : > { %3856 = vst [vmem:[%s6481_s26 + $0x30] sm:$0xff] %v3840_v37  ;;  %3862 = vst [vmem:[%s6481_s26 + $0x60] sm:$0xf] %v3769_v32  ;;  %v3842_v42 = vadd.f32 %v3841_v0, %v3528_v49  ;;  %v3771_v29 = vadd.f32 %v3770_v12, %v3533_v60 }
 0x42e   : > { %v3845_v24 = vpop.f32.mrf.mxu0 }
 0x42f   : > { %3857 = vst [vmem:[%s6481_s26 + $0x38] sm:$0xff] %v3842_v42  ;;  %3863 = vst [vmem:[%s6481_s26 + $0x68] sm:$0xf] %v3771_v29  ;;  %v3846_v23 = vadd.f32 %v3845_v24, %v3533_v60 }
 0x430   : > { %v3847_v2 = vpop.f32.mrf.mxu0 }
 0x431   : > { %3864 = vst [vmem:[%s6481_s26 + $0x70] sm:$0xf] %v3846_v23  ;;  %v3848_v35 = vadd.f32 %v3847_v2, %v3533_v60 }
 0x433   : > { %3865 = vst [vmem:[%s6481_s26 + $0x78] sm:$0xf] %v3848_v35 }
 0x434 PF: > { %s14_s15 = sadd.s32 1, %s4377_s15  }
 0x435   : > { %p11_p4 = scmp.ge.s32.totalorder %s14_s15, 4  }
 0x437   :  { %13 = sbr.rel (!%p11_p4) target bundleno = 1 (0x1), region = 66 }

</bundles_post_ra>
